<compile_context>
chip_gen: v5e
topology: v5e:2x2
jax: 0.10.0
libtpu: 0.0.40
codegen_flags: <defaults>
</compile_context>

<pallas_src>
import math
import functools

import jax
import jax.numpy as jnp
from jax.experimental import pallas as pl
from jax.experimental.pallas import tpu as pltpu

# --- stand-ins for the `hyperparams` module referenced by the PyTorch code ---
SEQ_LENGTH = 8
PADDING_CHAR_IDX = 0
UNK_CHAR_IDX = 1

# --- small model config (CharacterTransformer.__init__ / init_with_vocab) ---
EMBED_DIM = 32          # embed_dim
NHEAD = 4               # nhead
NUM_LAYERS = 2          # num_decoder_layers
DIM_FF = 64             # dim_feedforward
VOCAB_SIZE = 32         # len(vocab)
VOCAB_PAD = 128         # lane-dense padded logits width (>= VOCAB_SIZE, mult. of 128)
LN_EPS = 1e-5
NEG_INF = -1e30

VOCAB_CHARS = ["<pad>", "<unk>"] + list("abcdefghijklmnopqrstuvwxyz .,!")
assert len(VOCAB_CHARS) == VOCAB_SIZE
CHAR_TO_IDX = {c: i for i, c in enumerate(VOCAB_CHARS)}


# ----------------------------- kernel helpers --------------------------------
def _layernorm(x, g, b):
    # PyTorch nn.LayerNorm over last dim, biased variance, eps=1e-5 (f32 VPU math)
    mu = jnp.mean(x, axis=-1, keepdims=True)
    var = jnp.mean(jnp.square(x - mu), axis=-1, keepdims=True)
    return (x - mu) * jax.lax.rsqrt(var + LN_EPS) * g + b


# ------------------------------- fused kernel ---------------------------------
def fused_forward_kernel(emb_ref, pe_ref, bias_ref,
                         g1_ref, b1_ref, wqkv_ref, bqkv_ref, wo_ref, bo_ref,
                         g2_ref, b2_ref, w1_ref, b1f_ref, w2_ref, b2f_ref,
                         gn_ref, bn_ref, wf_ref, bf_ref,
                         o_ref, *, S, E, H, FF, L):
    """Whole CharacterTransformer forward for one batch element (grid step)."""
    Dh = E // H
    att_scale = 1.0 / math.sqrt(Dh)
    bf16 = jnp.bfloat16

    # ---- embedding * sqrt(E) + positional encoding (dropout == identity) ----
    x = emb_ref[...] * math.sqrt(E) + pe_ref[...]          # [S, E] f32
    bias = bias_ref[0]                                     # [S, S] additive mask

    for l in range(L):                                     # static, fully unrolled
        # --- self-attention sub-block (pre-LN): x = x + SA(LN1(x)) ---
        h1 = _layernorm(x, g1_ref[l], b1_ref[l])
        qkv = jnp.dot(h1.astype(bf16), wqkv_ref[l],
                      preferred_element_type=jnp.float32) + bqkv_ref[l]   # [S, 3E]

        # three contiguous lane slices -> head-split via a pure minor reshape
        q = qkv[:, 0 * E:1 * E].reshape(S, H, Dh).astype(bf16)
        k = qkv[:, 1 * E:2 * E].reshape(S, H, Dh).astype(bf16)
        v = qkv[:, 2 * E:3 * E].reshape(S, H, Dh).astype(bf16)

        # all heads at once: H is the batch dim of the dot_general
        s = jnp.einsum('qhd,khd->hqk', q, k,
                       preferred_element_type=jnp.float32) * att_scale    # [H,S,S]
        s = s + bias[None, :, :]                            # bias added once, bcast over H
        s = s - jnp.max(s, axis=-1, keepdims=True)
        p = jnp.exp(s)
        p = p * pl.reciprocal(jnp.sum(p, axis=-1, keepdims=True), approx=True)
        ctx = jnp.einsum('hqk,khd->qhd', p.astype(bf16), v,
                         preferred_element_type=jnp.float32)              # [S,H,Dh]

        # one full out-projection matmul against Wo
        attn = jnp.dot(ctx.reshape(S, E).astype(bf16), wo_ref[l],
                       preferred_element_type=jnp.float32) + bo_ref[l]
        x = x + attn

        # --- feed-forward sub-block: x = x + W2(relu(W1(LN2(x)))) ---
        h2 = _layernorm(x, g2_ref[l], b2_ref[l])
        f = jnp.maximum(
            jnp.dot(h2.astype(bf16), w1_ref[l],
                    preferred_element_type=jnp.float32) + b1f_ref[l], 0.0)
        f = jnp.dot(f.astype(bf16), w2_ref[l],
                    preferred_element_type=jnp.float32) + b2f_ref[l]
        x = x + f

    # ---- decoder_norm (LayerNorm) + fc_out (Linear E -> V, lane-padded to 128) ----
    hN = _layernorm(x, gn_ref[...], bn_ref[...])
    o_ref[...] = jnp.dot(hN.astype(bf16), wf_ref[...],
                         preferred_element_type=jnp.float32) + bf_ref[...]


# ------------------------------ params ----------------------------------------
def init_params(key):
    E, FF, V, VP, S, L = EMBED_DIM, DIM_FF, VOCAB_SIZE, VOCAB_PAD, SEQ_LENGTH, NUM_LAYERS
    keys = iter(jax.random.split(key, 64))

    def u(shape, lim):
        return jax.random.uniform(next(keys), shape, dtype=jnp.float32,
                                  minval=-lim, maxval=lim)

    # nn.Embedding, uniform(-0.1, 0.1), padding row zeroed
    emb = u((V, E), 0.1).at[PADDING_CHAR_IDX].set(0.0)

    # sinusoidal positional encoding buffer (PositionalEncoding)
    pos = jnp.arange(S, dtype=jnp.float32)[:, None]
    div = jnp.exp(jnp.arange(0, E, 2, dtype=jnp.float32) * (-math.log(10000.0) / E))
    pe = jnp.zeros((S, E), jnp.float32)
    pe = pe.at[:, 0::2].set(jnp.sin(pos * div))
    pe = pe.at[:, 1::2].set(jnp.cos(pos * div))

    lim_e, lim_ff = 1.0 / math.sqrt(E), 1.0 / math.sqrt(FF)

    def stack(make):
        return jnp.stack([make() for _ in range(L)], axis=0)

    # fc_out padded to a lane-dense 128-wide slab (extra columns zero, sliced
    # off in the wrapper so the kernel's final store is full-width).
    wf = jnp.zeros((E, VP), jnp.float32).at[:, :V].set(u((E, V), 0.1))
    bf = jnp.zeros((1, VP), jnp.float32)

    bf16 = jnp.bfloat16
    return dict(
        emb=emb, pe=pe,
        # per-layer weights stacked on a leading [NUM_LAYERS, ...] axis;
        # MXU weight operands stored bf16, LN/bias params stay f32.
        g1=jnp.ones((L, 1, E), jnp.float32), b1=jnp.zeros((L, 1, E), jnp.float32),
        wqkv=stack(lambda: u((E, 3 * E), lim_e)).astype(bf16),   # fused [Wq|Wk|Wv]
        bqkv=jnp.zeros((L, 1, 3 * E), jnp.float32),
        wo=stack(lambda: u((E, E), lim_e)).astype(bf16),
        bo=jnp.zeros((L, 1, E), jnp.float32),
        g2=jnp.ones((L, 1, E), jnp.float32), b2=jnp.zeros((L, 1, E), jnp.float32),
        w1=stack(lambda: u((E, FF), lim_e)).astype(bf16),
        b1f=stack(lambda: u((1, FF), lim_e)),
        w2=stack(lambda: u((FF, E), lim_ff)).astype(bf16),
        b2f=stack(lambda: u((1, E), lim_ff)),
        gn=jnp.ones((1, E), jnp.float32), bn=jnp.zeros((1, E), jnp.float32),
        wf=wf.astype(bf16), bf=bf,
    )


def tokenize(src):
    # Host-side string -> ids (the PyTorch forward's python tokenization loop).
    rows = []
    for text in src:
        ids = [CHAR_TO_IDX.get(ch, UNK_CHAR_IDX) for ch in text][:SEQ_LENGTH]
        ids = ids + [PADDING_CHAR_IDX] * (SEQ_LENGTH - len(ids))
        rows.append(ids)
    return jnp.asarray(rows, dtype=jnp.int32)


# ------------------------------ pallas glue -----------------------------------
@jax.jit
def forward(params, input_ids):
    B, S = input_ids.shape
    E, V, VP = EMBED_DIM, VOCAB_SIZE, VOCAB_PAD

    # embedding lookup (data-dependent gather) stays in plain-JAX glue
    emb = jnp.take(params["emb"], input_ids.reshape(-1), axis=0)          # [B*S, E]

    # additive attention bias: causal upper-triangle + key padding
    idx = jnp.arange(S)
    causal = jnp.where(idx[None, :] > idx[:, None], NEG_INF, 0.0)         # [S, S]
    pad = jnp.where(input_ids == PADDING_CHAR_IDX, NEG_INF, 0.0)          # [B, S]
    bias = (causal[None, :, :] + pad[:, None, :]).astype(jnp.float32)     # [B, S, S]

    weights = (params["g1"], params["b1"], params["wqkv"], params["bqkv"],
               params["wo"], params["bo"], params["g2"], params["b2"],
               params["w1"], params["b1f"], params["w2"], params["b2f"],
               params["gn"], params["bn"], params["wf"], params["bf"])
    inputs = (emb, params["pe"], bias) + weights

    def _const_spec(shape):
        nd = len(shape)
        return pl.BlockSpec(shape, lambda b, _nd=nd: (0,) * _nd)

    in_specs = [
        pl.BlockSpec((S, E), lambda b: (b, 0)),          # rows of batch b
        _const_spec((S, E)),                             # positional encoding (resident)
        pl.BlockSpec((1, S, S), lambda b: (b, 0, 0)),    # additive attention bias
    ] + [_const_spec(w.shape) for w in weights]          # weights: constant index maps

    # advisory cost estimate so XLA schedules the gather / bias build sensibly
    flops = int(B * S * (NUM_LAYERS * 2 * (3 * E * E + 2 * S * E + E * E + 2 * E * DIM_FF)
                         + 2 * E * VP))
    transcendentals = int(NUM_LAYERS * NHEAD * B * S * S)
    bytes_accessed = int(sum(a.size * a.dtype.itemsize for a in inputs) + B * S * VP * 4)

    kern = functools.partial(fused_forward_kernel, S=S, E=E,
                             H=NHEAD, FF=DIM_FF, L=NUM_LAYERS)
    logits_pad = pl.pallas_call(
        kern,
        out_shape=jax.ShapeDtypeStruct((B * S, VP), jnp.float32),
        grid=(B,),
        in_specs=in_specs,
        out_specs=pl.BlockSpec((S, VP), lambda b: (b, 0)),
        compiler_params=pltpu.CompilerParams(
            dimension_semantics=("parallel",)),
        cost_estimate=pl.CostEstimate(flops=flops,
                                      transcendentals=transcendentals,
                                      bytes_accessed=bytes_accessed),
    )(*inputs)

    # drop the lane padding, restore [B, S, V]
    return logits_pad[:, :V].reshape(B, S, V)


if __name__ == "__main__":
    key = jax.random.PRNGKey(0)
    params = init_params(key)

    src = ["hello tpu", "pallas ok!"]          # batch of 2 strings
    input_ids = tokenize(src)                  # [2, 8] int32

    logits = forward(params, input_ids)
    logits = jax.block_until_ready(logits)

    assert logits.shape == (2, SEQ_LENGTH, VOCAB_SIZE), logits.shape
    assert bool(jnp.all(jnp.isfinite(logits)))
    print("KERNEL_OK")
</pallas_src>

<mosaic_0001>
module attributes {stable_mosaic.version = 11 : i64} {
  func.func @fused_forward_kernel(%arg0: i32, %arg1: memref<8x32xf32, #tpu.memory_space<vmem>>, %arg2: memref<8x32xf32, #tpu.memory_space<vmem>>, %arg3: memref<1x8x8xf32, #tpu.memory_space<vmem>>, %arg4: memref<2x1x32xf32, #tpu.memory_space<vmem>>, %arg5: memref<2x1x32xf32, #tpu.memory_space<vmem>>, %arg6: memref<2x32x96xbf16, #tpu.memory_space<vmem>>, %arg7: memref<2x1x96xf32, #tpu.memory_space<vmem>>, %arg8: memref<2x32x32xbf16, #tpu.memory_space<vmem>>, %arg9: memref<2x1x32xf32, #tpu.memory_space<vmem>>, %arg10: memref<2x1x32xf32, #tpu.memory_space<vmem>>, %arg11: memref<2x1x32xf32, #tpu.memory_space<vmem>>, %arg12: memref<2x32x64xbf16, #tpu.memory_space<vmem>>, %arg13: memref<2x1x64xf32, #tpu.memory_space<vmem>>, %arg14: memref<2x64x32xbf16, #tpu.memory_space<vmem>>, %arg15: memref<2x1x32xf32, #tpu.memory_space<vmem>>, %arg16: memref<1x32xf32, #tpu.memory_space<vmem>>, %arg17: memref<1x32xf32, #tpu.memory_space<vmem>>, %arg18: memref<32x128xbf16, #tpu.memory_space<vmem>>, %arg19: memref<1x128xf32, #tpu.memory_space<vmem>>, %arg20: memref<8x128xf32, #tpu.memory_space<vmem>>) attributes {dimension_semantics = [#tpu.dimension_semantics<parallel>], iteration_bounds = array<i64: 2>, scalar_prefetch = 0 : i64, scratch_operands = 0 : i64, tpu.core_type = #tpu.core_type<tc>, window_params = [{transform_indices = @transform_0, window_bounds = array<i64: 8, 32>}, {pipeline_mode = #tpu.pipeline_mode<synchronous>, transform_indices = @transform_1, window_bounds = array<i64: 8, 32>}, {transform_indices = @transform_2, window_bounds = array<i64: 1, 8, 8>}, {pipeline_mode = #tpu.pipeline_mode<synchronous>, transform_indices = @transform_3, window_bounds = array<i64: 2, 1, 32>}, {pipeline_mode = #tpu.pipeline_mode<synchronous>, transform_indices = @transform_4, window_bounds = array<i64: 2, 1, 32>}, {pipeline_mode = #tpu.pipeline_mode<synchronous>, transform_indices = @transform_5, window_bounds = array<i64: 2, 32, 96>}, {pipeline_mode = #tpu.pipeline_mode<synchronous>, transform_indices = @transform_6, window_bounds = array<i64: 2, 1, 96>}, {pipeline_mode = #tpu.pipeline_mode<synchronous>, transform_indices = @transform_7, window_bounds = array<i64: 2, 32, 32>}, {pipeline_mode = #tpu.pipeline_mode<synchronous>, transform_indices = @transform_8, window_bounds = array<i64: 2, 1, 32>}, {pipeline_mode = #tpu.pipeline_mode<synchronous>, transform_indices = @transform_9, window_bounds = array<i64: 2, 1, 32>}, {pipeline_mode = #tpu.pipeline_mode<synchronous>, transform_indices = @transform_10, window_bounds = array<i64: 2, 1, 32>}, {pipeline_mode = #tpu.pipeline_mode<synchronous>, transform_indices = @transform_11, window_bounds = array<i64: 2, 32, 64>}, {pipeline_mode = #tpu.pipeline_mode<synchronous>, transform_indices = @transform_12, window_bounds = array<i64: 2, 1, 64>}, {pipeline_mode = #tpu.pipeline_mode<synchronous>, transform_indices = @transform_13, window_bounds = array<i64: 2, 64, 32>}, {pipeline_mode = #tpu.pipeline_mode<synchronous>, transform_indices = @transform_14, window_bounds = array<i64: 2, 1, 32>}, {pipeline_mode = #tpu.pipeline_mode<synchronous>, transform_indices = @transform_15, window_bounds = array<i64: 1, 32>}, {pipeline_mode = #tpu.pipeline_mode<synchronous>, transform_indices = @transform_16, window_bounds = array<i64: 1, 32>}, {pipeline_mode = #tpu.pipeline_mode<synchronous>, transform_indices = @transform_17, window_bounds = array<i64: 32, 128>}, {pipeline_mode = #tpu.pipeline_mode<synchronous>, transform_indices = @transform_18, window_bounds = array<i64: 1, 128>}, {transform_indices = @transform_19, window_bounds = array<i64: 8, 128>}]} {
    %c0 = arith.constant 0 : index
    %c0_0 = arith.constant 0 : index
    %0 = vector.load %arg1[%c0, %c0_0] : memref<8x32xf32, #tpu.memory_space<vmem>>, vector<8x32xf32>
    %cst = arith.constant 5.65685415 : f32
    %1 = vector.broadcast %cst : f32 to vector<8x32xf32>
    %2 = arith.mulf %0, %1 : vector<8x32xf32>
    %c0_1 = arith.constant 0 : index
    %c0_2 = arith.constant 0 : index
    %3 = vector.load %arg2[%c0_1, %c0_2] : memref<8x32xf32, #tpu.memory_space<vmem>>, vector<8x32xf32>
    %4 = arith.addf %2, %3 : vector<8x32xf32>
    %c0_3 = arith.constant 0 : index
    %c0_4 = arith.constant 0 : index
    %c0_5 = arith.constant 0 : index
    %5 = vector.load %arg3[%c0_3, %c0_4, %c0_5] : memref<1x8x8xf32, #tpu.memory_space<vmem>>, vector<1x8x8xf32>
    %6 = vector.shape_cast %5 : vector<1x8x8xf32> to vector<8x8xf32>
    %c0_6 = arith.constant 0 : index
    %c0_7 = arith.constant 0 : index
    %c0_8 = arith.constant 0 : index
    %7 = vector.load %arg4[%c0_6, %c0_7, %c0_8] : memref<2x1x32xf32, #tpu.memory_space<vmem>>, vector<1x1x32xf32>
    %8 = vector.shape_cast %7 : vector<1x1x32xf32> to vector<1x32xf32>
    %c0_9 = arith.constant 0 : index
    %c0_10 = arith.constant 0 : index
    %c0_11 = arith.constant 0 : index
    %9 = vector.load %arg5[%c0_9, %c0_10, %c0_11] : memref<2x1x32xf32, #tpu.memory_space<vmem>>, vector<1x1x32xf32>
    %10 = vector.shape_cast %9 : vector<1x1x32xf32> to vector<1x32xf32>
    %cst_12 = arith.constant dense<0.000000e+00> : vector<8xf32>
    %11 = vector.multi_reduction <add>, %4, %cst_12 [1] : vector<8x32xf32> to vector<8xf32>
    %12 = vector.shape_cast %11 : vector<8xf32> to vector<8x1xf32>
    %cst_13 = arith.constant 3.200000e+01 : f32
    %13 = vector.broadcast %cst_13 : f32 to vector<8x1xf32>
    %14 = arith.divf %12, %13 : vector<8x1xf32>
    %15 = vector.broadcast %14 : vector<8x1xf32> to vector<8x32xf32>
    %16 = arith.subf %4, %15 : vector<8x32xf32>
    %17 = arith.mulf %16, %16 : vector<8x32xf32>
    %cst_14 = arith.constant dense<0.000000e+00> : vector<8xf32>
    %18 = vector.multi_reduction <add>, %17, %cst_14 [1] : vector<8x32xf32> to vector<8xf32>
    %19 = vector.shape_cast %18 : vector<8xf32> to vector<8x1xf32>
    %cst_15 = arith.constant 3.200000e+01 : f32
    %20 = vector.broadcast %cst_15 : f32 to vector<8x1xf32>
    %21 = arith.divf %19, %20 : vector<8x1xf32>
    %22 = vector.broadcast %14 : vector<8x1xf32> to vector<8x32xf32>
    %23 = arith.subf %4, %22 : vector<8x32xf32>
    %cst_16 = arith.constant 9.99999974E-6 : f32
    %24 = vector.broadcast %cst_16 : f32 to vector<8x1xf32>
    %25 = arith.addf %21, %24 : vector<8x1xf32>
    %26 = math.rsqrt %25 : vector<8x1xf32>
    %27 = vector.broadcast %26 : vector<8x1xf32> to vector<8x32xf32>
    %28 = arith.mulf %23, %27 : vector<8x32xf32>
    %29 = vector.broadcast %8 : vector<1x32xf32> to vector<8x32xf32>
    %30 = arith.mulf %28, %29 : vector<8x32xf32>
    %31 = vector.broadcast %10 : vector<1x32xf32> to vector<8x32xf32>
    %32 = arith.addf %30, %31 : vector<8x32xf32>
    %33 = arith.truncf %32 : vector<8x32xf32> to vector<8x32xbf16>
    %c0_17 = arith.constant 0 : index
    %c0_18 = arith.constant 0 : index
    %c0_19 = arith.constant 0 : index
    %34 = vector.load %arg6[%c0_17, %c0_18, %c0_19] : memref<2x32x96xbf16, #tpu.memory_space<vmem>>, vector<1x32x96xbf16>
    %35 = vector.shape_cast %34 : vector<1x32x96xbf16> to vector<32x96xbf16>
    %cst_20 = arith.constant dense<0.000000e+00> : vector<8x96xf32>
    %36 = tpu.matmul %33, %35, %cst_20 {dimension_numbers = #tpu.dot_dimension_numbers<[1], [0], [0], [1], [0, 0, 1, 1], [], []>} : vector<8x32xbf16>, vector<32x96xbf16>, vector<8x96xf32> -> vector<8x96xf32>
    %c0_21 = arith.constant 0 : index
    %c0_22 = arith.constant 0 : index
    %c0_23 = arith.constant 0 : index
    %37 = vector.load %arg7[%c0_21, %c0_22, %c0_23] : memref<2x1x96xf32, #tpu.memory_space<vmem>>, vector<1x1x96xf32>
    %38 = vector.shape_cast %37 : vector<1x1x96xf32> to vector<1x96xf32>
    %39 = vector.broadcast %38 : vector<1x96xf32> to vector<8x96xf32>
    %40 = arith.addf %36, %39 : vector<8x96xf32>
    %41 = vector.extract_strided_slice %40 {offsets = [0, 0], sizes = [8, 32], strides = [1, 1]} : vector<8x96xf32> to vector<8x32xf32>
    %42 = vector.shape_cast %41 : vector<8x32xf32> to vector<8x4x8xf32>
    %43 = arith.truncf %42 : vector<8x4x8xf32> to vector<8x4x8xbf16>
    %44 = vector.extract_strided_slice %40 {offsets = [0, 32], sizes = [8, 32], strides = [1, 1]} : vector<8x96xf32> to vector<8x32xf32>
    %45 = vector.shape_cast %44 : vector<8x32xf32> to vector<8x4x8xf32>
    %46 = arith.truncf %45 : vector<8x4x8xf32> to vector<8x4x8xbf16>
    %47 = vector.extract_strided_slice %40 {offsets = [0, 64], sizes = [8, 32], strides = [1, 1]} : vector<8x96xf32> to vector<8x32xf32>
    %48 = vector.shape_cast %47 : vector<8x32xf32> to vector<8x4x8xf32>
    %49 = arith.truncf %48 : vector<8x4x8xf32> to vector<8x4x8xbf16>
    "tpu.trace_start"() <{level = 10 : i32, message = "qhd,khd->hqk"}> : () -> ()
    %cst_24 = arith.constant dense<0.000000e+00> : vector<4x8x8xf32>
    %50 = tpu.matmul %43, %46, %cst_24 {dimension_numbers = #tpu.dot_dimension_numbers<[2], [2], [0], [0], [0, 1, 0, 0, 1, 0], [1], [1]>} : vector<8x4x8xbf16>, vector<8x4x8xbf16>, vector<4x8x8xf32> -> vector<4x8x8xf32>
    "tpu.trace_stop"() : () -> ()
    %cst_25 = arith.constant 0.353553385 : f32
    %51 = vector.broadcast %cst_25 : f32 to vector<4x8x8xf32>
    %52 = arith.mulf %50, %51 : vector<4x8x8xf32>
    %53 = vector.shape_cast %6 : vector<8x8xf32> to vector<1x8x8xf32>
    %54 = vector.broadcast %53 : vector<1x8x8xf32> to vector<4x8x8xf32>
    %55 = arith.addf %52, %54 : vector<4x8x8xf32>
    %cst_26 = arith.constant dense<0xFF800000> : vector<4x8xf32>
    %56 = vector.multi_reduction <maximumf>, %55, %cst_26 [2] : vector<4x8x8xf32> to vector<4x8xf32>
    %57 = vector.shape_cast %56 : vector<4x8xf32> to vector<4x8x1xf32>
    %58 = vector.broadcast %57 : vector<4x8x1xf32> to vector<4x8x8xf32>
    %59 = arith.subf %55, %58 : vector<4x8x8xf32>
    %60 = math.exp %59 : vector<4x8x8xf32>
    %cst_27 = arith.constant dense<0.000000e+00> : vector<4x8xf32>
    %61 = vector.multi_reduction <add>, %60, %cst_27 [2] : vector<4x8x8xf32> to vector<4x8xf32>
    %62 = vector.shape_cast %61 : vector<4x8xf32> to vector<4x8x1xf32>
    %63 = tpu.reciprocal %62 {approx = true} : vector<4x8x1xf32> -> vector<4x8x1xf32>
    %64 = vector.broadcast %63 : vector<4x8x1xf32> to vector<4x8x8xf32>
    %65 = arith.mulf %60, %64 : vector<4x8x8xf32>
    %66 = arith.truncf %65 : vector<4x8x8xf32> to vector<4x8x8xbf16>
    "tpu.trace_start"() <{level = 10 : i32, message = "hqk,khd->qhd"}> : () -> ()
    %cst_28 = arith.constant dense<0.000000e+00> : vector<4x8x8xf32>
    %67 = tpu.matmul %49, %66, %cst_28 {dimension_numbers = #tpu.dot_dimension_numbers<[0], [2], [2], [1], [0, 1, 0, 2, 1, 1], [1], [0]>} : vector<8x4x8xbf16>, vector<4x8x8xbf16>, vector<4x8x8xf32> -> vector<4x8x8xf32>
    %68 = tpu.transpose %67, [2, 0, 1] : vector<4x8x8xf32> -> vector<8x4x8xf32>
    "tpu.trace_stop"() : () -> ()
    %69 = vector.shape_cast %68 : vector<8x4x8xf32> to vector<8x32xf32>
    %70 = arith.truncf %69 : vector<8x32xf32> to vector<8x32xbf16>
    %c0_29 = arith.constant 0 : index
    %c0_30 = arith.constant 0 : index
    %c0_31 = arith.constant 0 : index
    %71 = vector.load %arg8[%c0_29, %c0_30, %c0_31] : memref<2x32x32xbf16, #tpu.memory_space<vmem>>, vector<1x32x32xbf16>
    %72 = vector.shape_cast %71 : vector<1x32x32xbf16> to vector<32x32xbf16>
    %cst_32 = arith.constant dense<0.000000e+00> : vector<8x32xf32>
    %73 = tpu.matmul %70, %72, %cst_32 {dimension_numbers = #tpu.dot_dimension_numbers<[1], [0], [0], [1], [0, 0, 1, 1], [], []>} : vector<8x32xbf16>, vector<32x32xbf16>, vector<8x32xf32> -> vector<8x32xf32>
    %c0_33 = arith.constant 0 : index
    %c0_34 = arith.constant 0 : index
    %c0_35 = arith.constant 0 : index
    %74 = vector.load %arg9[%c0_33, %c0_34, %c0_35] : memref<2x1x32xf32, #tpu.memory_space<vmem>>, vector<1x1x32xf32>
    %75 = vector.shape_cast %74 : vector<1x1x32xf32> to vector<1x32xf32>
    %76 = vector.broadcast %75 : vector<1x32xf32> to vector<8x32xf32>
    %77 = arith.addf %73, %76 : vector<8x32xf32>
    %78 = arith.addf %4, %77 : vector<8x32xf32>
    %c0_36 = arith.constant 0 : index
    %c0_37 = arith.constant 0 : index
    %c0_38 = arith.constant 0 : index
    %79 = vector.load %arg10[%c0_36, %c0_37, %c0_38] : memref<2x1x32xf32, #tpu.memory_space<vmem>>, vector<1x1x32xf32>
    %80 = vector.shape_cast %79 : vector<1x1x32xf32> to vector<1x32xf32>
    %c0_39 = arith.constant 0 : index
    %c0_40 = arith.constant 0 : index
    %c0_41 = arith.constant 0 : index
    %81 = vector.load %arg11[%c0_39, %c0_40, %c0_41] : memref<2x1x32xf32, #tpu.memory_space<vmem>>, vector<1x1x32xf32>
    %82 = vector.shape_cast %81 : vector<1x1x32xf32> to vector<1x32xf32>
    %cst_42 = arith.constant dense<0.000000e+00> : vector<8xf32>
    %83 = vector.multi_reduction <add>, %78, %cst_42 [1] : vector<8x32xf32> to vector<8xf32>
    %84 = vector.shape_cast %83 : vector<8xf32> to vector<8x1xf32>
    %cst_43 = arith.constant 3.200000e+01 : f32
    %85 = vector.broadcast %cst_43 : f32 to vector<8x1xf32>
    %86 = arith.divf %84, %85 : vector<8x1xf32>
    %87 = vector.broadcast %86 : vector<8x1xf32> to vector<8x32xf32>
    %88 = arith.subf %78, %87 : vector<8x32xf32>
    %89 = arith.mulf %88, %88 : vector<8x32xf32>
    %cst_44 = arith.constant dense<0.000000e+00> : vector<8xf32>
    %90 = vector.multi_reduction <add>, %89, %cst_44 [1] : vector<8x32xf32> to vector<8xf32>
    %91 = vector.shape_cast %90 : vector<8xf32> to vector<8x1xf32>
    %cst_45 = arith.constant 3.200000e+01 : f32
    %92 = vector.broadcast %cst_45 : f32 to vector<8x1xf32>
    %93 = arith.divf %91, %92 : vector<8x1xf32>
    %94 = vector.broadcast %86 : vector<8x1xf32> to vector<8x32xf32>
    %95 = arith.subf %78, %94 : vector<8x32xf32>
    %cst_46 = arith.constant 9.99999974E-6 : f32
    %96 = vector.broadcast %cst_46 : f32 to vector<8x1xf32>
    %97 = arith.addf %93, %96 : vector<8x1xf32>
    %98 = math.rsqrt %97 : vector<8x1xf32>
    %99 = vector.broadcast %98 : vector<8x1xf32> to vector<8x32xf32>
    %100 = arith.mulf %95, %99 : vector<8x32xf32>
    %101 = vector.broadcast %80 : vector<1x32xf32> to vector<8x32xf32>
    %102 = arith.mulf %100, %101 : vector<8x32xf32>
    %103 = vector.broadcast %82 : vector<1x32xf32> to vector<8x32xf32>
    %104 = arith.addf %102, %103 : vector<8x32xf32>
    %105 = arith.truncf %104 : vector<8x32xf32> to vector<8x32xbf16>
    %c0_47 = arith.constant 0 : index
    %c0_48 = arith.constant 0 : index
    %c0_49 = arith.constant 0 : index
    %106 = vector.load %arg12[%c0_47, %c0_48, %c0_49] : memref<2x32x64xbf16, #tpu.memory_space<vmem>>, vector<1x32x64xbf16>
    %107 = vector.shape_cast %106 : vector<1x32x64xbf16> to vector<32x64xbf16>
    %cst_50 = arith.constant dense<0.000000e+00> : vector<8x64xf32>
    %108 = tpu.matmul %105, %107, %cst_50 {dimension_numbers = #tpu.dot_dimension_numbers<[1], [0], [0], [1], [0, 0, 1, 1], [], []>} : vector<8x32xbf16>, vector<32x64xbf16>, vector<8x64xf32> -> vector<8x64xf32>
    %c0_51 = arith.constant 0 : index
    %c0_52 = arith.constant 0 : index
    %c0_53 = arith.constant 0 : index
    %109 = vector.load %arg13[%c0_51, %c0_52, %c0_53] : memref<2x1x64xf32, #tpu.memory_space<vmem>>, vector<1x1x64xf32>
    %110 = vector.shape_cast %109 : vector<1x1x64xf32> to vector<1x64xf32>
    %111 = vector.broadcast %110 : vector<1x64xf32> to vector<8x64xf32>
    %112 = arith.addf %108, %111 : vector<8x64xf32>
    %cst_54 = arith.constant 0.000000e+00 : f32
    %113 = vector.broadcast %cst_54 : f32 to vector<8x64xf32>
    %114 = arith.maximumf %112, %113 : vector<8x64xf32>
    %115 = arith.truncf %114 : vector<8x64xf32> to vector<8x64xbf16>
    %c0_55 = arith.constant 0 : index
    %c0_56 = arith.constant 0 : index
    %c0_57 = arith.constant 0 : index
    %116 = vector.load %arg14[%c0_55, %c0_56, %c0_57] : memref<2x64x32xbf16, #tpu.memory_space<vmem>>, vector<1x64x32xbf16>
    %117 = vector.shape_cast %116 : vector<1x64x32xbf16> to vector<64x32xbf16>
    %cst_58 = arith.constant dense<0.000000e+00> : vector<8x32xf32>
    %118 = tpu.matmul %115, %117, %cst_58 {dimension_numbers = #tpu.dot_dimension_numbers<[1], [0], [0], [1], [0, 0, 1, 1], [], []>} : vector<8x64xbf16>, vector<64x32xbf16>, vector<8x32xf32> -> vector<8x32xf32>
    %c0_59 = arith.constant 0 : index
    %c0_60 = arith.constant 0 : index
    %c0_61 = arith.constant 0 : index
    %119 = vector.load %arg15[%c0_59, %c0_60, %c0_61] : memref<2x1x32xf32, #tpu.memory_space<vmem>>, vector<1x1x32xf32>
    %120 = vector.shape_cast %119 : vector<1x1x32xf32> to vector<1x32xf32>
    %121 = vector.broadcast %120 : vector<1x32xf32> to vector<8x32xf32>
    %122 = arith.addf %118, %121 : vector<8x32xf32>
    %123 = arith.addf %78, %122 : vector<8x32xf32>
    %c1 = arith.constant 1 : index
    %c0_62 = arith.constant 0 : index
    %c0_63 = arith.constant 0 : index
    %124 = vector.load %arg4[%c1, %c0_62, %c0_63] : memref<2x1x32xf32, #tpu.memory_space<vmem>>, vector<1x1x32xf32>
    %125 = vector.shape_cast %124 : vector<1x1x32xf32> to vector<1x32xf32>
    %c1_64 = arith.constant 1 : index
    %c0_65 = arith.constant 0 : index
    %c0_66 = arith.constant 0 : index
    %126 = vector.load %arg5[%c1_64, %c0_65, %c0_66] : memref<2x1x32xf32, #tpu.memory_space<vmem>>, vector<1x1x32xf32>
    %127 = vector.shape_cast %126 : vector<1x1x32xf32> to vector<1x32xf32>
    %cst_67 = arith.constant dense<0.000000e+00> : vector<8xf32>
    %128 = vector.multi_reduction <add>, %123, %cst_67 [1] : vector<8x32xf32> to vector<8xf32>
    %129 = vector.shape_cast %128 : vector<8xf32> to vector<8x1xf32>
    %cst_68 = arith.constant 3.200000e+01 : f32
    %130 = vector.broadcast %cst_68 : f32 to vector<8x1xf32>
    %131 = arith.divf %129, %130 : vector<8x1xf32>
    %132 = vector.broadcast %131 : vector<8x1xf32> to vector<8x32xf32>
    %133 = arith.subf %123, %132 : vector<8x32xf32>
    %134 = arith.mulf %133, %133 : vector<8x32xf32>
    %cst_69 = arith.constant dense<0.000000e+00> : vector<8xf32>
    %135 = vector.multi_reduction <add>, %134, %cst_69 [1] : vector<8x32xf32> to vector<8xf32>
    %136 = vector.shape_cast %135 : vector<8xf32> to vector<8x1xf32>
    %cst_70 = arith.constant 3.200000e+01 : f32
    %137 = vector.broadcast %cst_70 : f32 to vector<8x1xf32>
    %138 = arith.divf %136, %137 : vector<8x1xf32>
    %139 = vector.broadcast %131 : vector<8x1xf32> to vector<8x32xf32>
    %140 = arith.subf %123, %139 : vector<8x32xf32>
    %cst_71 = arith.constant 9.99999974E-6 : f32
    %141 = vector.broadcast %cst_71 : f32 to vector<8x1xf32>
    %142 = arith.addf %138, %141 : vector<8x1xf32>
    %143 = math.rsqrt %142 : vector<8x1xf32>
    %144 = vector.broadcast %143 : vector<8x1xf32> to vector<8x32xf32>
    %145 = arith.mulf %140, %144 : vector<8x32xf32>
    %146 = vector.broadcast %125 : vector<1x32xf32> to vector<8x32xf32>
    %147 = arith.mulf %145, %146 : vector<8x32xf32>
    %148 = vector.broadcast %127 : vector<1x32xf32> to vector<8x32xf32>
    %149 = arith.addf %147, %148 : vector<8x32xf32>
    %150 = arith.truncf %149 : vector<8x32xf32> to vector<8x32xbf16>
    %c1_72 = arith.constant 1 : index
    %c0_73 = arith.constant 0 : index
    %c0_74 = arith.constant 0 : index
    %151 = vector.load %arg6[%c1_72, %c0_73, %c0_74] : memref<2x32x96xbf16, #tpu.memory_space<vmem>>, vector<1x32x96xbf16>
    %152 = vector.shape_cast %151 : vector<1x32x96xbf16> to vector<32x96xbf16>
    %cst_75 = arith.constant dense<0.000000e+00> : vector<8x96xf32>
    %153 = tpu.matmul %150, %152, %cst_75 {dimension_numbers = #tpu.dot_dimension_numbers<[1], [0], [0], [1], [0, 0, 1, 1], [], []>} : vector<8x32xbf16>, vector<32x96xbf16>, vector<8x96xf32> -> vector<8x96xf32>
    %c1_76 = arith.constant 1 : index
    %c0_77 = arith.constant 0 : index
    %c0_78 = arith.constant 0 : index
    %154 = vector.load %arg7[%c1_76, %c0_77, %c0_78] : memref<2x1x96xf32, #tpu.memory_space<vmem>>, vector<1x1x96xf32>
    %155 = vector.shape_cast %154 : vector<1x1x96xf32> to vector<1x96xf32>
    %156 = vector.broadcast %155 : vector<1x96xf32> to vector<8x96xf32>
    %157 = arith.addf %153, %156 : vector<8x96xf32>
    %158 = vector.extract_strided_slice %157 {offsets = [0, 0], sizes = [8, 32], strides = [1, 1]} : vector<8x96xf32> to vector<8x32xf32>
    %159 = vector.shape_cast %158 : vector<8x32xf32> to vector<8x4x8xf32>
    %160 = arith.truncf %159 : vector<8x4x8xf32> to vector<8x4x8xbf16>
    %161 = vector.extract_strided_slice %157 {offsets = [0, 32], sizes = [8, 32], strides = [1, 1]} : vector<8x96xf32> to vector<8x32xf32>
    %162 = vector.shape_cast %161 : vector<8x32xf32> to vector<8x4x8xf32>
    %163 = arith.truncf %162 : vector<8x4x8xf32> to vector<8x4x8xbf16>
    %164 = vector.extract_strided_slice %157 {offsets = [0, 64], sizes = [8, 32], strides = [1, 1]} : vector<8x96xf32> to vector<8x32xf32>
    %165 = vector.shape_cast %164 : vector<8x32xf32> to vector<8x4x8xf32>
    %166 = arith.truncf %165 : vector<8x4x8xf32> to vector<8x4x8xbf16>
    "tpu.trace_start"() <{level = 10 : i32, message = "qhd,khd->hqk"}> : () -> ()
    %cst_79 = arith.constant dense<0.000000e+00> : vector<4x8x8xf32>
    %167 = tpu.matmul %160, %163, %cst_79 {dimension_numbers = #tpu.dot_dimension_numbers<[2], [2], [0], [0], [0, 1, 0, 0, 1, 0], [1], [1]>} : vector<8x4x8xbf16>, vector<8x4x8xbf16>, vector<4x8x8xf32> -> vector<4x8x8xf32>
    "tpu.trace_stop"() : () -> ()
    %cst_80 = arith.constant 0.353553385 : f32
    %168 = vector.broadcast %cst_80 : f32 to vector<4x8x8xf32>
    %169 = arith.mulf %167, %168 : vector<4x8x8xf32>
    %170 = vector.shape_cast %6 : vector<8x8xf32> to vector<1x8x8xf32>
    %171 = vector.broadcast %170 : vector<1x8x8xf32> to vector<4x8x8xf32>
    %172 = arith.addf %169, %171 : vector<4x8x8xf32>
    %cst_81 = arith.constant dense<0xFF800000> : vector<4x8xf32>
    %173 = vector.multi_reduction <maximumf>, %172, %cst_81 [2] : vector<4x8x8xf32> to vector<4x8xf32>
    %174 = vector.shape_cast %173 : vector<4x8xf32> to vector<4x8x1xf32>
    %175 = vector.broadcast %174 : vector<4x8x1xf32> to vector<4x8x8xf32>
    %176 = arith.subf %172, %175 : vector<4x8x8xf32>
    %177 = math.exp %176 : vector<4x8x8xf32>
    %cst_82 = arith.constant dense<0.000000e+00> : vector<4x8xf32>
    %178 = vector.multi_reduction <add>, %177, %cst_82 [2] : vector<4x8x8xf32> to vector<4x8xf32>
    %179 = vector.shape_cast %178 : vector<4x8xf32> to vector<4x8x1xf32>
    %180 = tpu.reciprocal %179 {approx = true} : vector<4x8x1xf32> -> vector<4x8x1xf32>
    %181 = vector.broadcast %180 : vector<4x8x1xf32> to vector<4x8x8xf32>
    %182 = arith.mulf %177, %181 : vector<4x8x8xf32>
    %183 = arith.truncf %182 : vector<4x8x8xf32> to vector<4x8x8xbf16>
    "tpu.trace_start"() <{level = 10 : i32, message = "hqk,khd->qhd"}> : () -> ()
    %cst_83 = arith.constant dense<0.000000e+00> : vector<4x8x8xf32>
    %184 = tpu.matmul %166, %183, %cst_83 {dimension_numbers = #tpu.dot_dimension_numbers<[0], [2], [2], [1], [0, 1, 0, 2, 1, 1], [1], [0]>} : vector<8x4x8xbf16>, vector<4x8x8xbf16>, vector<4x8x8xf32> -> vector<4x8x8xf32>
    %185 = tpu.transpose %184, [2, 0, 1] : vector<4x8x8xf32> -> vector<8x4x8xf32>
    "tpu.trace_stop"() : () -> ()
    %186 = vector.shape_cast %185 : vector<8x4x8xf32> to vector<8x32xf32>
    %187 = arith.truncf %186 : vector<8x32xf32> to vector<8x32xbf16>
    %c1_84 = arith.constant 1 : index
    %c0_85 = arith.constant 0 : index
    %c0_86 = arith.constant 0 : index
    %188 = vector.load %arg8[%c1_84, %c0_85, %c0_86] : memref<2x32x32xbf16, #tpu.memory_space<vmem>>, vector<1x32x32xbf16>
    %189 = vector.shape_cast %188 : vector<1x32x32xbf16> to vector<32x32xbf16>
    %cst_87 = arith.constant dense<0.000000e+00> : vector<8x32xf32>
    %190 = tpu.matmul %187, %189, %cst_87 {dimension_numbers = #tpu.dot_dimension_numbers<[1], [0], [0], [1], [0, 0, 1, 1], [], []>} : vector<8x32xbf16>, vector<32x32xbf16>, vector<8x32xf32> -> vector<8x32xf32>
    %c1_88 = arith.constant 1 : index
    %c0_89 = arith.constant 0 : index
    %c0_90 = arith.constant 0 : index
    %191 = vector.load %arg9[%c1_88, %c0_89, %c0_90] : memref<2x1x32xf32, #tpu.memory_space<vmem>>, vector<1x1x32xf32>
    %192 = vector.shape_cast %191 : vector<1x1x32xf32> to vector<1x32xf32>
    %193 = vector.broadcast %192 : vector<1x32xf32> to vector<8x32xf32>
    %194 = arith.addf %190, %193 : vector<8x32xf32>
    %195 = arith.addf %123, %194 : vector<8x32xf32>
    %c1_91 = arith.constant 1 : index
    %c0_92 = arith.constant 0 : index
    %c0_93 = arith.constant 0 : index
    %196 = vector.load %arg10[%c1_91, %c0_92, %c0_93] : memref<2x1x32xf32, #tpu.memory_space<vmem>>, vector<1x1x32xf32>
    %197 = vector.shape_cast %196 : vector<1x1x32xf32> to vector<1x32xf32>
    %c1_94 = arith.constant 1 : index
    %c0_95 = arith.constant 0 : index
    %c0_96 = arith.constant 0 : index
    %198 = vector.load %arg11[%c1_94, %c0_95, %c0_96] : memref<2x1x32xf32, #tpu.memory_space<vmem>>, vector<1x1x32xf32>
    %199 = vector.shape_cast %198 : vector<1x1x32xf32> to vector<1x32xf32>
    %cst_97 = arith.constant dense<0.000000e+00> : vector<8xf32>
    %200 = vector.multi_reduction <add>, %195, %cst_97 [1] : vector<8x32xf32> to vector<8xf32>
    %201 = vector.shape_cast %200 : vector<8xf32> to vector<8x1xf32>
    %cst_98 = arith.constant 3.200000e+01 : f32
    %202 = vector.broadcast %cst_98 : f32 to vector<8x1xf32>
    %203 = arith.divf %201, %202 : vector<8x1xf32>
    %204 = vector.broadcast %203 : vector<8x1xf32> to vector<8x32xf32>
    %205 = arith.subf %195, %204 : vector<8x32xf32>
    %206 = arith.mulf %205, %205 : vector<8x32xf32>
    %cst_99 = arith.constant dense<0.000000e+00> : vector<8xf32>
    %207 = vector.multi_reduction <add>, %206, %cst_99 [1] : vector<8x32xf32> to vector<8xf32>
    %208 = vector.shape_cast %207 : vector<8xf32> to vector<8x1xf32>
    %cst_100 = arith.constant 3.200000e+01 : f32
    %209 = vector.broadcast %cst_100 : f32 to vector<8x1xf32>
    %210 = arith.divf %208, %209 : vector<8x1xf32>
    %211 = vector.broadcast %203 : vector<8x1xf32> to vector<8x32xf32>
    %212 = arith.subf %195, %211 : vector<8x32xf32>
    %cst_101 = arith.constant 9.99999974E-6 : f32
    %213 = vector.broadcast %cst_101 : f32 to vector<8x1xf32>
    %214 = arith.addf %210, %213 : vector<8x1xf32>
    %215 = math.rsqrt %214 : vector<8x1xf32>
    %216 = vector.broadcast %215 : vector<8x1xf32> to vector<8x32xf32>
    %217 = arith.mulf %212, %216 : vector<8x32xf32>
    %218 = vector.broadcast %197 : vector<1x32xf32> to vector<8x32xf32>
    %219 = arith.mulf %217, %218 : vector<8x32xf32>
    %220 = vector.broadcast %199 : vector<1x32xf32> to vector<8x32xf32>
    %221 = arith.addf %219, %220 : vector<8x32xf32>
    %222 = arith.truncf %221 : vector<8x32xf32> to vector<8x32xbf16>
    %c1_102 = arith.constant 1 : index
    %c0_103 = arith.constant 0 : index
    %c0_104 = arith.constant 0 : index
    %223 = vector.load %arg12[%c1_102, %c0_103, %c0_104] : memref<2x32x64xbf16, #tpu.memory_space<vmem>>, vector<1x32x64xbf16>
    %224 = vector.shape_cast %223 : vector<1x32x64xbf16> to vector<32x64xbf16>
    %cst_105 = arith.constant dense<0.000000e+00> : vector<8x64xf32>
    %225 = tpu.matmul %222, %224, %cst_105 {dimension_numbers = #tpu.dot_dimension_numbers<[1], [0], [0], [1], [0, 0, 1, 1], [], []>} : vector<8x32xbf16>, vector<32x64xbf16>, vector<8x64xf32> -> vector<8x64xf32>
    %c1_106 = arith.constant 1 : index
    %c0_107 = arith.constant 0 : index
    %c0_108 = arith.constant 0 : index
    %226 = vector.load %arg13[%c1_106, %c0_107, %c0_108] : memref<2x1x64xf32, #tpu.memory_space<vmem>>, vector<1x1x64xf32>
    %227 = vector.shape_cast %226 : vector<1x1x64xf32> to vector<1x64xf32>
    %228 = vector.broadcast %227 : vector<1x64xf32> to vector<8x64xf32>
    %229 = arith.addf %225, %228 : vector<8x64xf32>
    %cst_109 = arith.constant 0.000000e+00 : f32
    %230 = vector.broadcast %cst_109 : f32 to vector<8x64xf32>
    %231 = arith.maximumf %229, %230 : vector<8x64xf32>
    %232 = arith.truncf %231 : vector<8x64xf32> to vector<8x64xbf16>
    %c1_110 = arith.constant 1 : index
    %c0_111 = arith.constant 0 : index
    %c0_112 = arith.constant 0 : index
    %233 = vector.load %arg14[%c1_110, %c0_111, %c0_112] : memref<2x64x32xbf16, #tpu.memory_space<vmem>>, vector<1x64x32xbf16>
    %234 = vector.shape_cast %233 : vector<1x64x32xbf16> to vector<64x32xbf16>
    %cst_113 = arith.constant dense<0.000000e+00> : vector<8x32xf32>
    %235 = tpu.matmul %232, %234, %cst_113 {dimension_numbers = #tpu.dot_dimension_numbers<[1], [0], [0], [1], [0, 0, 1, 1], [], []>} : vector<8x64xbf16>, vector<64x32xbf16>, vector<8x32xf32> -> vector<8x32xf32>
    %c1_114 = arith.constant 1 : index
    %c0_115 = arith.constant 0 : index
    %c0_116 = arith.constant 0 : index
    %236 = vector.load %arg15[%c1_114, %c0_115, %c0_116] : memref<2x1x32xf32, #tpu.memory_space<vmem>>, vector<1x1x32xf32>
    %237 = vector.shape_cast %236 : vector<1x1x32xf32> to vector<1x32xf32>
    %238 = vector.broadcast %237 : vector<1x32xf32> to vector<8x32xf32>
    %239 = arith.addf %235, %238 : vector<8x32xf32>
    %240 = arith.addf %195, %239 : vector<8x32xf32>
    %c0_117 = arith.constant 0 : index
    %c0_118 = arith.constant 0 : index
    %241 = vector.load %arg16[%c0_117, %c0_118] : memref<1x32xf32, #tpu.memory_space<vmem>>, vector<1x32xf32>
    %c0_119 = arith.constant 0 : index
    %c0_120 = arith.constant 0 : index
    %242 = vector.load %arg17[%c0_119, %c0_120] : memref<1x32xf32, #tpu.memory_space<vmem>>, vector<1x32xf32>
    %cst_121 = arith.constant dense<0.000000e+00> : vector<8xf32>
    %243 = vector.multi_reduction <add>, %240, %cst_121 [1] : vector<8x32xf32> to vector<8xf32>
    %244 = vector.shape_cast %243 : vector<8xf32> to vector<8x1xf32>
    %cst_122 = arith.constant 3.200000e+01 : f32
    %245 = vector.broadcast %cst_122 : f32 to vector<8x1xf32>
    %246 = arith.divf %244, %245 : vector<8x1xf32>
    %247 = vector.broadcast %246 : vector<8x1xf32> to vector<8x32xf32>
    %248 = arith.subf %240, %247 : vector<8x32xf32>
    %249 = arith.mulf %248, %248 : vector<8x32xf32>
    %cst_123 = arith.constant dense<0.000000e+00> : vector<8xf32>
    %250 = vector.multi_reduction <add>, %249, %cst_123 [1] : vector<8x32xf32> to vector<8xf32>
    %251 = vector.shape_cast %250 : vector<8xf32> to vector<8x1xf32>
    %cst_124 = arith.constant 3.200000e+01 : f32
    %252 = vector.broadcast %cst_124 : f32 to vector<8x1xf32>
    %253 = arith.divf %251, %252 : vector<8x1xf32>
    %254 = vector.broadcast %246 : vector<8x1xf32> to vector<8x32xf32>
    %255 = arith.subf %240, %254 : vector<8x32xf32>
    %cst_125 = arith.constant 9.99999974E-6 : f32
    %256 = vector.broadcast %cst_125 : f32 to vector<8x1xf32>
    %257 = arith.addf %253, %256 : vector<8x1xf32>
    %258 = math.rsqrt %257 : vector<8x1xf32>
    %259 = vector.broadcast %258 : vector<8x1xf32> to vector<8x32xf32>
    %260 = arith.mulf %255, %259 : vector<8x32xf32>
    %261 = vector.broadcast %241 : vector<1x32xf32> to vector<8x32xf32>
    %262 = arith.mulf %260, %261 : vector<8x32xf32>
    %263 = vector.broadcast %242 : vector<1x32xf32> to vector<8x32xf32>
    %264 = arith.addf %262, %263 : vector<8x32xf32>
    %265 = arith.truncf %264 : vector<8x32xf32> to vector<8x32xbf16>
    %c0_126 = arith.constant 0 : index
    %c0_127 = arith.constant 0 : index
    %266 = vector.load %arg18[%c0_126, %c0_127] : memref<32x128xbf16, #tpu.memory_space<vmem>>, vector<32x128xbf16>
    %cst_128 = arith.constant dense<0.000000e+00> : vector<8x128xf32>
    %267 = tpu.matmul %265, %266, %cst_128 {dimension_numbers = #tpu.dot_dimension_numbers<[1], [0], [0], [1], [0, 0, 1, 1], [], []>} : vector<8x32xbf16>, vector<32x128xbf16>, vector<8x128xf32> -> vector<8x128xf32>
    %c0_129 = arith.constant 0 : index
    %c0_130 = arith.constant 0 : index
    %268 = vector.load %arg19[%c0_129, %c0_130] : memref<1x128xf32, #tpu.memory_space<vmem>>, vector<1x128xf32>
    %269 = vector.broadcast %268 : vector<1x128xf32> to vector<8x128xf32>
    %270 = arith.addf %267, %269 : vector<8x128xf32>
    %c0_131 = arith.constant 0 : index
    %c0_132 = arith.constant 0 : index
    %271 = vector.load %arg20[%c0_131, %c0_132] : memref<8x128xf32, #tpu.memory_space<vmem>>, vector<8x128xf32>
    tpu.vector_store %arg20[%c0_131, %c0_132], %270 {strides = array<i32>} : memref<8x128xf32, #tpu.memory_space<vmem>>, vector<8x128xf32>,
    return
  }
  func.func @transform_0(%arg0: i32) -> (i32, i32) {
    %c0_i32 = arith.constant 0 : i32
    %c0_i32_0 = arith.constant 0 : i32
    return %arg0, %c0_i32 : i32, i32
  }
  func.func @transform_1(%arg0: i32) -> (i32, i32) {
    %c0_i32 = arith.constant 0 : i32
    %c0_i32_0 = arith.constant 0 : i32
    %c0_i32_1 = arith.constant 0 : i32
    return %c0_i32, %c0_i32_0 : i32, i32
  }
  func.func @transform_2(%arg0: i32) -> (i32, i32, i32) {
    %c0_i32 = arith.constant 0 : i32
    %c0_i32_0 = arith.constant 0 : i32
    %c0_i32_1 = arith.constant 0 : i32
    return %arg0, %c0_i32, %c0_i32_0 : i32, i32, i32
  }
  func.func @transform_3(%arg0: i32) -> (i32, i32, i32) {
    %c0_i32 = arith.constant 0 : i32
    %c0_i32_0 = arith.constant 0 : i32
    %c0_i32_1 = arith.constant 0 : i32
    %c0_i32_2 = arith.constant 0 : i32
    return %c0_i32, %c0_i32_0, %c0_i32_1 : i32, i32, i32
  }
  func.func @transform_4(%arg0: i32) -> (i32, i32, i32) {
    %c0_i32 = arith.constant 0 : i32
    %c0_i32_0 = arith.constant 0 : i32
    %c0_i32_1 = arith.constant 0 : i32
    %c0_i32_2 = arith.constant 0 : i32
    return %c0_i32, %c0_i32_0, %c0_i32_1 : i32, i32, i32
  }
  func.func @transform_5(%arg0: i32) -> (i32, i32, i32) {
    %c0_i32 = arith.constant 0 : i32
    %c0_i32_0 = arith.constant 0 : i32
    %c0_i32_1 = arith.constant 0 : i32
    %c0_i32_2 = arith.constant 0 : i32
    return %c0_i32, %c0_i32_0, %c0_i32_1 : i32, i32, i32
  }
  func.func @transform_6(%arg0: i32) -> (i32, i32, i32) {
    %c0_i32 = arith.constant 0 : i32
    %c0_i32_0 = arith.constant 0 : i32
    %c0_i32_1 = arith.constant 0 : i32
    %c0_i32_2 = arith.constant 0 : i32
    return %c0_i32, %c0_i32_0, %c0_i32_1 : i32, i32, i32
  }
  func.func @transform_7(%arg0: i32) -> (i32, i32, i32) {
    %c0_i32 = arith.constant 0 : i32
    %c0_i32_0 = arith.constant 0 : i32
    %c0_i32_1 = arith.constant 0 : i32
    %c0_i32_2 = arith.constant 0 : i32
    return %c0_i32, %c0_i32_0, %c0_i32_1 : i32, i32, i32
  }
  func.func @transform_8(%arg0: i32) -> (i32, i32, i32) {
    %c0_i32 = arith.constant 0 : i32
    %c0_i32_0 = arith.constant 0 : i32
    %c0_i32_1 = arith.constant 0 : i32
    %c0_i32_2 = arith.constant 0 : i32
    return %c0_i32, %c0_i32_0, %c0_i32_1 : i32, i32, i32
  }
  func.func @transform_9(%arg0: i32) -> (i32, i32, i32) {
    %c0_i32 = arith.constant 0 : i32
    %c0_i32_0 = arith.constant 0 : i32
    %c0_i32_1 = arith.constant 0 : i32
    %c0_i32_2 = arith.constant 0 : i32
    return %c0_i32, %c0_i32_0, %c0_i32_1 : i32, i32, i32
  }
  func.func @transform_10(%arg0: i32) -> (i32, i32, i32) {
    %c0_i32 = arith.constant 0 : i32
    %c0_i32_0 = arith.constant 0 : i32
    %c0_i32_1 = arith.constant 0 : i32
    %c0_i32_2 = arith.constant 0 : i32
    return %c0_i32, %c0_i32_0, %c0_i32_1 : i32, i32, i32
  }
  func.func @transform_11(%arg0: i32) -> (i32, i32, i32) {
    %c0_i32 = arith.constant 0 : i32
    %c0_i32_0 = arith.constant 0 : i32
    %c0_i32_1 = arith.constant 0 : i32
    %c0_i32_2 = arith.constant 0 : i32
    return %c0_i32, %c0_i32_0, %c0_i32_1 : i32, i32, i32
  }
  func.func @transform_12(%arg0: i32) -> (i32, i32, i32) {
    %c0_i32 = arith.constant 0 : i32
    %c0_i32_0 = arith.constant 0 : i32
    %c0_i32_1 = arith.constant 0 : i32
    %c0_i32_2 = arith.constant 0 : i32
    return %c0_i32, %c0_i32_0, %c0_i32_1 : i32, i32, i32
  }
  func.func @transform_13(%arg0: i32) -> (i32, i32, i32) {
    %c0_i32 = arith.constant 0 : i32
    %c0_i32_0 = arith.constant 0 : i32
    %c0_i32_1 = arith.constant 0 : i32
    %c0_i32_2 = arith.constant 0 : i32
    return %c0_i32, %c0_i32_0, %c0_i32_1 : i32, i32, i32
  }
  func.func @transform_14(%arg0: i32) -> (i32, i32, i32) {
    %c0_i32 = arith.constant 0 : i32
    %c0_i32_0 = arith.constant 0 : i32
    %c0_i32_1 = arith.constant 0 : i32
    %c0_i32_2 = arith.constant 0 : i32
    return %c0_i32, %c0_i32_0, %c0_i32_1 : i32, i32, i32
  }
  func.func @transform_15(%arg0: i32) -> (i32, i32) {
    %c0_i32 = arith.constant 0 : i32
    %c0_i32_0 = arith.constant 0 : i32
    %c0_i32_1 = arith.constant 0 : i32
    return %c0_i32, %c0_i32_0 : i32, i32
  }
  func.func @transform_16(%arg0: i32) -> (i32, i32) {
    %c0_i32 = arith.constant 0 : i32
    %c0_i32_0 = arith.constant 0 : i32
    %c0_i32_1 = arith.constant 0 : i32
    return %c0_i32, %c0_i32_0 : i32, i32
  }
  func.func @transform_17(%arg0: i32) -> (i32, i32) {
    %c0_i32 = arith.constant 0 : i32
    %c0_i32_0 = arith.constant 0 : i32
    %c0_i32_1 = arith.constant 0 : i32
    return %c0_i32, %c0_i32_0 : i32, i32
  }
  func.func @transform_18(%arg0: i32) -> (i32, i32) {
    %c0_i32 = arith.constant 0 : i32
    %c0_i32_0 = arith.constant 0 : i32
    %c0_i32_1 = arith.constant 0 : i32
    return %c0_i32, %c0_i32_0 : i32, i32
  }
  func.func @transform_19(%arg0: i32) -> (i32, i32) {
    %c0_i32 = arith.constant 0 : i32
    %c0_i32_0 = arith.constant 0 : i32
    return %arg0, %c0_i32 : i32, i32
  }
}

</mosaic_0001>

<bundles_post_ra>
// kernel: forward.1
= control target key start
LH: loop header
LB: loop body
LE: loop exit
PB: predicated region body
PF: predicated region fallthrough
CT: control target
= control target key end

     0   :  { %s5595_s0 = inlined_call_operand.vmem [shape: f32[16,32], index: 0, kind: input, shape index: {}]   ;;  %s5596_s1 = inlined_call_operand.vmem [shape: f32[8,32], index: 1, kind: input, shape index: {}]   ;;  %s5597_s2 = inlined_call_operand.vmem [shape: f32[2,8,8], index: 2, kind: input, shape index: {}]   ;;  %s5598_s3 = inlined_call_operand.vmem [shape: f32[2,1,32], index: 3, kind: input, shape index: {}]   ;;  %s5599_s4 = inlined_call_operand.vmem [shape: f32[2,1,32], index: 4, kind: input, shape index: {}]   ;;  %s5600_s5 = inlined_call_operand.vmem [shape: bf16[2,32,96], index: 5, kind: input, shape index: {}]   ;;  %s5601_s6 = inlined_call_operand.vmem [shape: f32[2,1,96], index: 6, kind: input, shape index: {}]   ;;  %s5602_s7 = inlined_call_operand.vmem [shape: bf16[2,32,32], index: 7, kind: input, shape index: {}]   ;;  %s5603_s8 = inlined_call_operand.vmem [shape: f32[2,1,32], index: 8, kind: input, shape index: {}]   ;;  %s5604_s9 = inlined_call_operand.vmem [shape: f32[2,1,32], index: 9, kind: input, shape index: {}]   ;;  %s5605_s10 = inlined_call_operand.vmem [shape: f32[2,1,32], index: 10, kind: input, shape index: {}]   ;;  %s5606_s11 = inlined_call_operand.vmem [shape: bf16[2,32,64], index: 11, kind: input, shape index: {}]   ;;  %s5607_s12 = inlined_call_operand.vmem [shape: f32[2,1,64], index: 12, kind: input, shape index: {}]   ;;  %s5608_s13 = inlined_call_operand.vmem [shape: bf16[2,64,32], index: 13, kind: input, shape index: {}]   ;;  %s5609_s14 = inlined_call_operand.vmem [shape: f32[2,1,32], index: 14, kind: input, shape index: {}]   ;;  %s5610_s15 = inlined_call_operand.vmem [shape: f32[1,32], index: 15, kind: input, shape index: {}]   ;;  %s5611_s16 = inlined_call_operand.vmem [shape: f32[1,32], index: 16, kind: input, shape index: {}]   ;;  %s5612_s17 = inlined_call_operand.vmem [shape: bf16[32,128], index: 17, kind: input, shape index: {}]   ;;  %s5613_s18 = inlined_call_operand.vmem [shape: f32[1,128], index: 18, kind: input, shape index: {}]   ;;  %s5614_s19 = inlined_call_operand.vmem [shape: f32[16,128], index: 19, kind: output, shape index: {}]  }
   0x1   :  { %5623 = sst [smem:[#allocation2_spill]] %s5595_s0  ;;  %s4848_s0 = smov 0  }
   0x2   :  { %5624 = sst [smem:[#allocation3_spill]] %s5596_s1 }
   0x3   :  { %5625 = sst [smem:[#allocation4_spill]] %s5597_s2 }
   0x4   :  { %5626 = sst [smem:[#allocation5_spill]] %s5598_s3 }
   0x5 LB: > { %s4307_s30 = sadd.s32 4294967295, %s4735_s0   ;;  %p4311_p0 = scmp.ge.s32.totalorder %s4735_s0, 1  ;;  %s4735_s0 = sphi %s4848_s0, %s29_s0  }
   0x6   : > { %p545_p1 = scmp.lt.s32.totalorder %s4735_s0, 3 }
   0x8   : > { %p546_p2 = pnand %p4311_p0, %p545_p1 }
   0x9   : > { %p603_p3 = scmp.lt.s32.totalorder (!%p546_p2), %s4307_s30, 1  ;;  %s5627_s22 = sld [smem:[#allocation2_spill]] (!%p546_p2) }
   0xa   : > { %549 = sbr.rel (%p546_p2) target bundleno = 6094 (0x17ce), region = 96  ;;  %s5628_s25 = sld [smem:[#allocation3_spill]] (!%p546_p2) }
   0xb   : > { %s5629_s21 = sld [smem:[#allocation5_spill]] (!%p546_p2)  ;;  %s4738_s24 = smov (!%p546_p2), 112  }
   0xc   : > { %s4740_s3 = smov (!%p546_p2), 104   ;;  %s5616_s26 = smov (!%p546_p2), 96  }
   0xd   : > { %s5621_s27 = smov (!%p546_p2), 64   ;;  %s5618_s23 = smov (!%p546_p2), 8  }
   0xe   : > { %s5631_s28 = smov (!%p546_p2), 64   ;;  %s5632_s29 = smov (!%p546_p2), 96  }
   0xf   : > { %s5637_s30 = smov (!%p603_p3, %s4307_s30), 1  ;;  %vm623_vm0 = vcmask 261120   ;;  %v4737_v5 = vmov 32.0   ;;  %v4459_v17 = vld [vmem:[%s5600_s5 + $0x8] sm:$0xff]  ;;  %v4458_v18 = vld [vmem:[%s5600_s5] sm:$0xff]  ;;  %vm709_vm5 = vcmask 1047556  }
  0x10   : > { %s4856_s20 = sshll.u32 %s5637_s30, 3  ;;  %v618_v1 = vld [vmem:[%s5628_s25] sm:$0xff]  ;;  %4684 = vrcp.f32 %v4737_v5  ;;  %691 = vmatpush.bf16.msra.mxu0 %v4459_v17  ;;  %s4739_s25 = smov 120   ;;  %v4742_v47 = vmov 1983009808   ;;  %vm1378_vm6 = vcmask 1043456  }
  0x11   : > { %s606_s2 = scalar_lea.vmem %s5627_s22, %s4856_s20  ;;  %v4665_v28 = vld [vmem:[%s5629_s21] ss:$0 sm:$0xff]  ;;  %v714_v48 = vunpack.c.l.s4 %v4742_v47  ;;  %v4743_v55 = vmov 1934713408   ;;  %vm1374_vm7 = vcmask 64512   ;;  %s5630_s30 = sld [smem:[#allocation4_spill]] }
  0x12   : > { %v616_v0 = vld [vmem:[%s606_s2] sm:$0xff]  ;;  %v738_v56 = vunpack.c.l.s4 %v4743_v55  ;;  %s5620_s22 = smov 24   ;;  %s5619_s2 = smov 16   ;;  %vm2231_vm8 = vcmask 130048   ;;  %vm2233_vm9 = vcmask 195584   ;;  %vm2380_vm13 = vcmask 523264  }
  0x13   : > { %v617_v2 = vmul.f32 5.656854, %v616_v0  ;;  %v4666_v31 = vld [vmem:[%s5599_s4] ss:$0 sm:$0xff]  ;;  %v4917_v54 = vunpack.c.0.s8 %v714_v48 }
  0x14   : > { %692 = vmatpush.bf16.msra.mxu0 %v4458_v18  ;;  %v4667_v35 = vld [vmem:[%s5601_s6] ss:$0 sm:$0xff]  ;;  %v4926_v5 = vunpack.c.0.s8 %v738_v56 }
  0x15   : > { %v4865_v3 = vadd.f32 %v618_v1, %v617_v2 }
  0x16   : > { %v4685_v6 = vpop.eup %4684 }
  0x17   : > { %v624_v4 = vsel %vm623_vm0, %v4865_v3, 0.0  ;;  %v628_v7 = vmul.f32 32.0, %v4685_v6  ;;  %vm632_vm1 = vweird.f32 %v4685_v6  ;;  %s5049_s1 = scalar_lea.vmem %s5630_s30, %s4856_s20 }
  0x18   : > { %625 = vadd.xlane.f32.xlu0 %v624_v4 }
  0x19   : > { %v629_v8 = vsub.f32 1.0, %v628_v7 }
  0x1b   : > { %v630_v9 = vmul.f32 %v4685_v6, %v629_v8 }
  0x1d   : > { %v631_v10 = vadd.f32 %v4685_v6, %v630_v9 }
  0x1f   : > { %v4869_v11 = vsel %vm632_vm1, %v4685_v6, %v631_v10 }
  0x8b   : > { %v626_v12 = vpop.xlane.xlu0 %625 }
  0x8c   : > { %v634_v13 = vmul.f32 %v4869_v11, %v626_v12 }
  0x8e   : > { %v635_v14 = vsub.f32 %v4865_v3, %v634_v13 }
  0x90   : > { %v636_v15 = vmul.f32 %v635_v14, %v635_v14 }
  0x92   : > { %v637_v16 = vsel %vm623_vm0, %v636_v15, 0.0 }
  0x93   : > { %638 = vadd.xlane.f32.xlu0 %v637_v16 }
 0x106   : > { %v639_v19 = vpop.xlane.xlu0 %638 }
 0x107   : > { %v640_v20 = vmul.f32 %v639_v19, %v4869_v11 }
 0x109   : > { %v641_v21 = vadd.f32 1e-05, %v640_v20 }
 0x10b   : > { %4686 = vrsqrt.f32 %v641_v21  ;;  %vm648_vm3 = vweird.f32 %v641_v21 }
 0x111   : > { %v4687_v22 = vpop.eup %4686 }
 0x112   : > { %v643_v23 = vmul.f32 %v4687_v22, %v641_v21  ;;  %vm649_vm2 = vweird.f32 %v4687_v22 }
 0x113   : > { %vm650_vm4 = vmor %vm648_vm3, %vm649_vm2 }
 0x114   : > { %v644_v24 = vmul.f32 %v4687_v22, %v643_v23 }
 0x116   : > { %v645_v25 = vmul.f32 0.5, %v644_v24 }
 0x118   : > { %v646_v26 = vsub.f32 1.5, %v645_v25 }
 0x11a   : > { %v647_v27 = vmul.f32 %v4687_v22, %v646_v26 }
 0x11c   : > { %v651_v29 = vsel %vm650_vm4, %v4687_v22, %v647_v27 }
 0x11d   : > { %v652_v30 = vmul.f32 %v651_v29, %v635_v14 }
 0x11f   : > { %v656_v32 = vmul.f32 %v4665_v28, %v652_v30 }
 0x121   : > { %v660_v33 = vadd.f32 %v4666_v31, %v656_v32 }
 0x123   : > { %v661_v34 = vpack.c.bf16 %v660_v33, %v660_v33 }
 0x125   : > { %4323 = vmatmul.msk.bf16.vlgmr.msra.gmra.mxu0 %vm623_vm0, %v661_v34 }
 0x1a2   : > { %v694_v36 = vpop.f32.mrf.mxu0 }
 0x1a3   : > { %v4891_v37 = vadd.f32 %v4667_v35, %v694_v36 }
 0x1a5   : > { %702 = vrot.lane.b32.xlu2 %v4891_v37, %s4738_s24  ;;  %699 = vrot.lane.b32.xlu1 %v4891_v37, %s4739_s25 }
 0x1aa   : > { %v696_v38 = vpop.f32.mrf.mxu0 }
 0x1ad   : > { %705 = vrot.lane.b32.xlu1 %v4891_v37, %s4740_s3 }
 0x1ff   : > { %v4907_v41 = vpop.permute.xlu2 %702 }
 0x217   : > { %v4899_v39 = vpop.permute.xlu1 %699 }
 0x218   : > { %v4903_v40 = vpack.i.bf16 %v4891_v37, %v4899_v39 }
 0x21a   : > { %4502 = vrot.lane.b32.xlu2 %v4903_v40, %s5616_s26 }
 0x21f   : > { %v4909_v42 = vpop.permute.xlu1 %705 }
 0x220   : > { %v4913_v43 = vpack.i.bf16 %v4907_v41, %v4909_v42 }
 0x222   : > { %4507 = vrot.lane.b32.xlu0 %v4913_v43, %s5616_s26 }
 0x274   : > { %v4503_v44 = vpop.permute.xlu2 %4502 }
 0x275   : > { %v4505_v45 = vunpack.i.h.bf16 %v4503_v44  ;;  %v4504_v46 = vunpack.i.l.bf16 %v4503_v44 }
 0x277   : > { %v787_v50 = vrot.slane %v4505_v45, 4  ;;  %v799_v51 = vrot.slane %v4504_v46, 4 }
 0x294   : > { %v4508_v49 = vpop.permute.xlu0 %4507 }
 0x295   : > { %v4510_v52 = vunpack.i.h.bf16 %v4508_v49  ;;  %v4509_v53 = vunpack.i.l.bf16 %v4508_v49 }
 0x297   : > { %v785_v57 = vrot.slane %v4510_v52, 4  ;;  %v788_v58 = vsel %vm709_vm5, %v4510_v52, %v787_v50  ;;  %v797_v59 = vrot.slane %v4509_v53, 4  ;;  %v800_v60 = vsel %vm709_vm5, %v4509_v53, %v799_v51 }
 0x298   : > { %v796_v61 = vperm.slane %v788_v58, %v4917_v54  ;;  %v808_v62 = vperm.slane %v800_v60, %v4917_v54 }
 0x299   : > { %v786_v63 = vsel %vm709_vm5, %v785_v57, %v4505_v45  ;;  %v798_v0 = vsel %vm709_vm5, %v797_v59, %v4504_v46 }
 0x29a   : > { %v823_v1 = vrot.slane %v796_v61, 4  ;;  %v804_v2 = vperm.slane %v798_v0, %v4917_v54  ;;  %v821_v4 = vrot.slane %v808_v62, 4  ;;  %v792_v6 = vperm.slane %v786_v63, %v4917_v54 }
 0x29c   : > { %v809_v7 = vrot.slane %v804_v2, 4  ;;  %v824_v8 = vsel %vm709_vm5, %v808_v62, %v823_v1  ;;  %v822_v9 = vsel %vm709_vm5, %v821_v4, %v796_v61  ;;  %v811_v23 = vrot.slane %v792_v6, 4 }
 0x29d   : > { %v832_v10 = vperm.slane %v824_v8, %v4926_v5  ;;  %v828_v12 = vperm.slane %v822_v9, %v4926_v5 }
 0x29e   : > { %v810_v13 = vsel %vm709_vm5, %v809_v7, %v792_v6  ;;  %v812_v28 = vsel %vm709_vm5, %v804_v2, %v811_v23 }
 0x29f   : > { %v839_v14 = vrot.slane %v832_v10, 4  ;;  %v837_v15 = vrot.slane %v828_v12, 4  ;;  %v816_v16 = vperm.slane %v810_v13, %v4926_v5  ;;  %v847_v19 = vpack.c.bf16 %v832_v10, %v832_v10 }
 0x2a0   : > { %v845_v24 = vpack.c.bf16 %v828_v12, %v828_v12  ;;  %v820_v29 = vperm.slane %v812_v28, %v4926_v5 }
 0x2a1   : > { %v840_v17 = vsel %vm709_vm5, 0.0, %v839_v14  ;;  %v838_v18 = vsel %vm709_vm5, 0.0, %v837_v15  ;;  %v833_v22 = vrot.slane %v816_v16, 4  ;;  %v841_v26 = vpack.c.bf16 %v816_v16, %v816_v16 }
 0x2a2   : > { %v848_v20 = vpack.c.bf16 %v840_v17, %v840_v17  ;;  %v846_v21 = vpack.c.bf16 %v838_v18, %v838_v18  ;;  %v835_v30 = vrot.slane %v820_v29, 4  ;;  %v843_v32 = vpack.c.bf16 %v820_v29, %v820_v29 }
 0x2a3   : > { %v834_v25 = vsel %vm709_vm5, 0.0, %v833_v22 }
 0x2a4   : > { %4514 = vxpose.binary.xlu0.c.b16.start.end [1/2] (short) (narrow) %v848_v20, %v847_v19, 16  ;;  %v842_v27 = vpack.c.bf16 %v834_v25, %v834_v25  ;;  %v836_v31 = vsel %vm709_vm5, 0.0, %v835_v30 }
 0x2a5   : > { %4511 = vxpose.binary.xlu1.c.b16.start.end [1/2] (short) (narrow) %v846_v21, %v845_v24, 16  ;;  %v844_v33 = vpack.c.bf16 %v836_v31, %v836_v31 }
 0x2a6   : > { %4517 = vxpose.binary.xlu2.c.b16.start.end [1/2] (short) (narrow) %v842_v27, %v841_v26, 16 }
 0x2b6   : > { %4520 = vxpose.binary.xlu2.c.b16.start.end [1/2] (short) (narrow) %v844_v33, %v843_v32, 16 }
 0x347   : > { %v4518_v34 = vpop.trf.xlu2 }
 0x34f   : > { %v4519_v35 = vpop.trf.xlu2 }
 0x350   : > { %v4515_v36 = vpop.trf.xlu0 }
 0x351   : > { %v4512_v38 = vpop.trf.xlu1  ;;  %v1112_v46 = vrot.slane %v4515_v36, 4  ;;  %v711_v36 = vrot.slane %v4891_v37, 4 }
 0x352   : > { %v1106_v44 = vrot.slane %v4512_v38, 4  ;;  %v708_v38 = vrot.slane %v4907_v41, 4 }
 0x354   : > { %v1107_v45 = vsel %vm709_vm5, %v1106_v44, %v4518_v34  ;;  %v712_v44 = vsel %vm709_vm5, %v4907_v41, %v711_v36 }
 0x355   : > { %v1111_v47 = vperm.slane %v1107_v45, %v4917_v54  ;;  %v723_v45 = vrot.slane %v4899_v39, 4 }
 0x357   : > { %v4521_v48 = vpop.trf.xlu2  ;;  %v1120_v51 = vrot.slane %v1111_v47, 4 }
 0x358   : > { %v1113_v49 = vsel %vm709_vm5, %v1112_v46, %v4521_v48  ;;  %v4516_v55 = vpop.trf.xlu0  ;;  %v721_v46 = vrot.slane %v4909_v42, 4  ;;  %v720_v48 = vperm.slane %v712_v44, %v4917_v54 }
 0x359   : > { %v4513_v50 = vpop.trf.xlu1  ;;  %v1117_v52 = vperm.slane %v1113_v49, %v4917_v54  ;;  %v1140_v59 = vrot.slane %v4516_v55, 4 }
 0x35a   : > { %v1134_v53 = vrot.slane %v4513_v50, 4  ;;  %v722_v49 = vsel %vm709_vm5, %v721_v46, %v4899_v39  ;;  %v747_v41 = vrot.slane %v720_v48, 4 }
 0x35b   : > { %v1118_v56 = vrot.slane %v1117_v52, 4  ;;  %v1121_v57 = vsel %vm709_vm5, %v1117_v52, %v1120_v51  ;;  %v728_v51 = vperm.slane %v722_v49, %v4917_v54 }
 0x35c   : > { %v1135_v58 = vsel %vm709_vm5, %v1134_v53, %v4519_v35  ;;  %v1129_v62 = vperm.slane %v1121_v57, %v4926_v5 }
 0x35d   : > { %v1119_v60 = vsel %vm709_vm5, %v1118_v56, %v1111_v47  ;;  %v1139_v61 = vperm.slane %v1135_v58, %v4917_v54  ;;  %v724_v47 = vsel %vm709_vm5, %v4909_v42, %v723_v45  ;;  %v733_v56 = vrot.slane %v728_v51, 4 }
 0x35e   : > { %v1125_v63 = vperm.slane %v1119_v60, %v4926_v5  ;;  %v1132_v6 = vrot.slane %v1129_v62, 4  ;;  %v1182_v13 = vshrl.u32 %v1129_v62, 16 }
 0x35f   : > { %v4522_v0 = vpop.trf.xlu2  ;;  %v1148_v2 = vrot.slane %v1139_v61, 4 }
 0x360   : > { %v1141_v1 = vsel %vm709_vm5, %v1140_v59, %v4522_v0  ;;  %v1130_v9 = vrot.slane %v1125_v63, 4  ;;  %v1133_v16 = vsel %vm709_vm5, 0, %v1132_v6  ;;  %v1166_v33 = vshrl.u32 %v1125_v63, 16 }
 0x361   : > { %v1145_v4 = vperm.slane %v1141_v1, %v4917_v54  ;;  %v1190_v23 = vshrl.u32 %v1133_v16, 16 }
 0x362   : > { %v1131_v18 = vsel %vm709_vm5, 0, %v1130_v9 }
 0x363   : > { %v1146_v7 = vrot.slane %v1145_v4, 4  ;;  %v1149_v8 = vsel %vm709_vm5, %v1145_v4, %v1148_v2  ;;  %v1174_v28 = vshrl.u32 %v1131_v18, 16 }
 0x364   : > { %v1157_v10 = vperm.slane %v1149_v8, %v4926_v5 }
 0x365   : > { %v1147_v12 = vsel %vm709_vm5, %v1146_v7, %v1139_v61 }
 0x366   : > { %v1153_v14 = vperm.slane %v1147_v12, %v4926_v5  ;;  %v1183_v15 = vshrl.u32 %v1157_v10, 16  ;;  %v1160_v17 = vrot.slane %v1157_v10, 4  ;;  %v1180_v19 = vpack.i.b16 %v1157_v10, %v1129_v62 }
 0x368   : > { %v1184_v20 = vpack.i.b16 %v1183_v15, %v1182_v13  ;;  %v1161_v21 = vsel %vm709_vm5, 0, %v1160_v17  ;;  %v1158_v22 = vrot.slane %v1153_v14, 4  ;;  %v1167_v32 = vshrl.u32 %v1153_v14, 16 }
 0x369   : > { %v1191_v24 = vshrl.u32 %v1161_v21, 16  ;;  %v1188_v26 = vpack.i.b16 %v1161_v21, %v1133_v16  ;;  %v1164_v34 = vpack.i.b16 %v1153_v14, %v1125_v63 }
 0x36a   : > { %4523 = vxpose.binary.xlu2.c.b16.start.end [1/2] (short) (narrow) %v1184_v20, %v1180_v19, 16  ;;  %v1159_v25 = vsel %vm709_vm5, 0, %v1158_v22  ;;  %v1168_v35 = vpack.i.b16 %v1167_v32, %v1166_v33 }
 0x36b   : > { %v1192_v27 = vpack.i.b16 %v1191_v24, %v1190_v23  ;;  %v1175_v29 = vshrl.u32 %v1159_v25, 16  ;;  %v1172_v30 = vpack.i.b16 %v1159_v25, %v1131_v18 }
 0x36d   : > { %4529 = vxpose.binary.xlu1.c.b16.start.end [1/2] (short) (narrow) %v1192_v27, %v1188_v26, 16  ;;  %v1176_v31 = vpack.i.b16 %v1175_v29, %v1174_v28 }
 0x36f   : > { %4526 = vxpose.binary.xlu0.c.b16.start.end [1/2] (short) (narrow) %v1176_v31, %v1172_v30, 16 }
 0x37d   : > { %4532 = vxpose.binary.xlu1.c.b16.start.end [1/2] (short) (narrow) %v1168_v35, %v1164_v34, 16 }
 0x3d3   : > { %4541 = vrot.lane.b32.xlu2 %v4913_v43, %s5621_s27  ;;  %v710_v43 = vsel %vm709_vm5, %v708_v38, %v4891_v37 }
 0x3d4   : > { %v716_v50 = vperm.slane %v710_v43, %v4917_v54 }
 0x3d6   : > { %v735_v55 = vrot.slane %v716_v50, 4  ;;  %v734_v60 = vsel %vm709_vm5, %v733_v56, %v716_v50 }
 0x3d7   : > { %v740_v62 = vperm.slane %v734_v60, %v4926_v5 }
 0x3d8   : > { %v736_v57 = vsel %vm709_vm5, %v728_v51, %v735_v55 }
 0x3d9   : > { %v744_v58 = vperm.slane %v736_v57, %v4926_v5  ;;  %v757_v4 = vrot.slane %v740_v62, 4  ;;  %v765_v28 = vpack.c.bf16 %v740_v62, %v740_v62 }
 0x3db   : > { %v759_v63 = vrot.slane %v744_v58, 4  ;;  %v758_v16 = vsel %vm709_vm5, 0.0, %v757_v4  ;;  %v767_v17 = vpack.c.bf16 %v744_v58, %v744_v58 }
 0x3dc   : > { %v766_v23 = vpack.c.bf16 %v758_v16, %v758_v16 }
 0x3dd   : > { %4536 = vrot.lane.b32.xlu0 %v4903_v40, %s5621_s27  ;;  %v732_v40 = vperm.slane %v724_v47, %v4917_v54  ;;  %v760_v7 = vsel %vm709_vm5, 0.0, %v759_v63 }
 0x3de   : > { %v768_v15 = vpack.c.bf16 %v760_v7, %v760_v7 }
 0x3df   : > { %v745_v52 = vrot.slane %v732_v40, 4  ;;  %v748_v53 = vsel %vm709_vm5, %v732_v40, %v747_v41 }
 0x3e0   : > { %v756_v42 = vperm.slane %v748_v53, %v4926_v5 }
 0x3e1   : > { %v746_v37 = vsel %vm709_vm5, %v745_v52, %v720_v48 }
 0x3e2   : > { %v752_v39 = vperm.slane %v746_v37, %v4926_v5  ;;  %v763_v59 = vrot.slane %v756_v42, 4  ;;  %v771_v8 = vpack.c.bf16 %v756_v42, %v756_v42 }
 0x3e4   : > { %v761_v0 = vrot.slane %v752_v39, 4  ;;  %v764_v1 = vsel %vm709_vm5, 0.0, %v763_v59  ;;  %v769_v18 = vpack.c.bf16 %v752_v39, %v752_v39  ;;  %v932_v19 = vrot.slane %v771_v8, 4 }
 0x3e5   : > { %v772_v2 = vpack.c.bf16 %v764_v1, %v764_v1 }
 0x3e6   : > { %v762_v6 = vsel %vm709_vm5, 0.0, %v761_v0  ;;  %v925_v26 = vrot.slane %v769_v18, 4  ;;  %v933_v29 = vsel %vm709_vm5, %v932_v19, %v767_v17 }
 0x3e7   : > { %v770_v12 = vpack.c.bf16 %v762_v6, %v762_v6  ;;  %v952_v13 = vrot.slane %v772_v2, 4  ;;  %v937_v36 = vperm.slane %v933_v29, %v4917_v54 }
 0x3e8   : > { %v927_v45 = vsel %vm709_vm5, %v925_v26, %v765_v28 }
 0x3e9   : > { %v946_v22 = vrot.slane %v770_v12, 4  ;;  %v953_v24 = vsel %vm709_vm5, %v952_v13, %v768_v15  ;;  %v931_v50 = vperm.slane %v927_v45, %v4917_v54  ;;  %v938_v41 = vrot.slane %v937_v36, 4 }
 0x3ea   : > { %v957_v31 = vperm.slane %v953_v24, %v4917_v54 }
 0x3eb   : > { %v947_v34 = vsel %vm709_vm5, %v946_v22, %v766_v23  ;;  %v939_v56 = vsel %vm709_vm5, %v938_v41, %v931_v50 }
 0x3ec   : > { %v951_v47 = vperm.slane %v947_v34, %v4917_v54  ;;  %v958_v48 = vrot.slane %v957_v31, 4  ;;  %v943_v60 = vperm.slane %v939_v56, %v4926_v5 }
 0x3ee   : > { %v959_v53 = vsel %vm709_vm5, %v958_v48, %v951_v47  ;;  %v944_v6 = vrot.slane %v943_v60, 4  ;;  %v969_v17 = vshrl.u32 %v943_v60, 16 }
 0x3ef   : > { %v963_v58 = vperm.slane %v959_v53, %v4926_v5 }
 0x3f0   : > { %v945_v22 = vsel %vm709_vm5, 0, %v944_v6 }
 0x3f1   : > { %v964_v63 = vrot.slane %v963_v58, 4  ;;  %v968_v16 = vpack.i.b16 %v963_v58, %v943_v60 }
 0x3f3   : > { %v965_v18 = vsel %vm709_vm5, 0, %v964_v63 }
 0x3f4   : > { %v974_v24 = vpack.i.b16 %v965_v18, %v945_v22 }
 0x40b   : > { %v4524_v20 = vpop.trf.xlu2 }
 0x40c   : > { %v1322_v25 = vrot.slane %v4524_v20, 4 }
 0x413   : > { %v4525_v43 = vpop.trf.xlu2 }
 0x414   : > { %v1342_v49 = vrot.slane %v4525_v43, 4 }
 0x419   : > { %v4530_v61 = vpop.trf.xlu1 }
 0x41a   : > { %v1328_v10 = vrot.slane %v4530_v61, 4 }
 0x41b   : > { %v4527_v9 = vpop.trf.xlu0 }
 0x41c   : > { %v1329_v21 = vsel %vm709_vm5, %v1328_v10, %v4527_v9  ;;  %v970_v10 = vshrl.u32 %v963_v58, 16 }
 0x41d   : > { %v1333_v27 = vperm.slane %v1329_v21, %v4917_v54 }
 0x41e   : > { %v971_v21 = vpack.i.b16 %v970_v10, %v969_v17 }
 0x41f   : > { %v1334_v38 = vrot.slane %v1333_v27, 4  ;;  %v975_v27 = vshrl.u32 %v945_v22, 16 }
 0x421   : > { %v4531_v14 = vpop.trf.xlu1 }
 0x422   : > { %v1348_v30 = vrot.slane %v4531_v14, 4 }
 0x423   : > { %v4528_v32 = vpop.trf.xlu0 }
 0x424   : > { %v1349_v46 = vsel %vm709_vm5, %v1348_v30, %v4528_v32 }
 0x425   : > { %v1353_v51 = vperm.slane %v1349_v46, %v4917_v54 }
 0x427   : > { %v1354_v57 = vrot.slane %v1353_v51, 4 }
 0x429   : > { %v4533_v33 = vpop.trf.xlu1 }
 0x42a   : > { %v1323_v35 = vsel %vm709_vm5, %v1322_v25, %v4533_v33  ;;  %v976_v25 = vshrl.u32 %v965_v18, 16 }
 0x42b   : > { %v1327_v44 = vperm.slane %v1323_v35, %v4917_v54 }
 0x42c   : > { %v977_v30 = vpack.i.b16 %v976_v25, %v975_v27 }
 0x42d   : > { %v1335_v40 = vsel %vm709_vm5, %v1334_v38, %v1327_v44  ;;  %v4542_v26 = vpop.permute.xlu2 %4541 }
 0x42e   : > { %v1339_v52 = vperm.slane %v1335_v40, %v4926_v5  ;;  %v4544_v28 = vunpack.i.h.bf16 %v4542_v26  ;;  %v4543_v29 = vunpack.i.l.bf16 %v4542_v26 }
 0x430   : > { %v1340_v39 = vrot.slane %v1339_v52, 4  ;;  %v1365_v62 = vshrl.u32 %v1339_v52, 16  ;;  %v861_v32 = vrot.slane %v4544_v28, 4  ;;  %v873_v33 = vrot.slane %v4543_v29, 4 }
 0x431   : > { %v4534_v55 = vpop.trf.xlu1 }
 0x432   : > { %v1343_v42 = vsel %vm709_vm5, %v1342_v49, %v4534_v55  ;;  %v1341_v2 = vsel %vm709_vm5, 0, %v1340_v39 }
 0x433   : > { %v1347_v37 = vperm.slane %v1343_v42, %v4917_v54  ;;  %v1371_v13 = vshrl.u32 %v1341_v2, 16 }
 0x435   : > { %v1355_v59 = vsel %vm709_vm5, %v1354_v57, %v1347_v37 }
 0x436   : > { %v1359_v61 = vperm.slane %v1355_v59, %v4926_v5 }
 0x438   : > { %v1364_v0 = vpack.i.b16 %v1359_v61, %v1339_v52  ;;  %v1366_v1 = vshrl.u32 %v1359_v61, 16  ;;  %v1360_v4 = vrot.slane %v1359_v61, 4 }
 0x43a   : > { %v1380_v7 = vsel %vm1378_vm6, %v1364_v0, 0  ;;  %v1367_v8 = vpack.i.b16 %v1366_v1, %v1365_v62  ;;  %v1361_v9 = vsel %vm709_vm5, 0, %v1360_v4 }
 0x43b   : > { %1389 = vmatpush.bf16.msra.mxu1 %v1380_v7  ;;  %v1370_v12 = vpack.i.b16 %v1361_v9, %v1341_v2  ;;  %v1372_v14 = vshrl.u32 %v1361_v9, 16 }
 0x43c   : > { %v1399_v15 = vsel %vm1378_vm6, %v1367_v8, 0  ;;  %v620_v8 = vld [vmem:[%s5049_s1] sm:$0xff] }
 0x43d   : > { %1408 = vmatpush.bf16.msra.mxu2 %v1399_v15  ;;  %v1418_v19 = vsel %vm1378_vm6, %v1370_v12, 0  ;;  %v1373_v20 = vpack.i.b16 %v1372_v14, %v1371_v13 }
 0x43e   : > { %4324 = vmatmul.msk.bf16.vlgmr.msra.gmra.mxu1 %vm1374_vm7, %v968_v16  ;;  %1427 = vmatpush.bf16.msra.mxu3 %v1418_v19 }
 0x43f   : > { %v1437_v23 = vsel %vm1378_vm6, %v1373_v20, 0 }
 0x440   : > { %4325 = vmatmul.msk.bf16.vlgmr.msra.gmra.mxu2 %vm1374_vm7, %v971_v21  ;;  %1446 = vmatpush.bf16.msrb.mxu1 %v1437_v23 }
 0x441   : > { %4326 = vmatmul.msk.bf16.vlgmr.msra.gmra.mxu3 %vm1374_vm7, %v974_v24 }
 0x44e   : > { %4327 = vmatmul.msk.bf16.vlgmr.msrb.gmra.mxu1 %vm1374_vm7, %v977_v30 }
 0x44f   : > { %v4537_v31 = vpop.permute.xlu0 %4536 }
 0x450   : > { %v4539_v34 = vunpack.i.h.bf16 %v4537_v31  ;;  %v4538_v35 = vunpack.i.l.bf16 %v4537_v31 }
 0x452   : > { %v862_v36 = vsel %vm709_vm5, %v861_v32, %v4539_v34  ;;  %v863_v38 = vrot.slane %v4539_v34, 4  ;;  %v874_v44 = vsel %vm709_vm5, %v873_v33, %v4538_v35  ;;  %v875_v45 = vrot.slane %v4538_v35, 4 }
 0x453   : > { %v880_v46 = vperm.slane %v874_v44, %v4917_v54  ;;  %v868_v43 = vperm.slane %v862_v36, %v4917_v54 }
 0x454   : > { %v864_v47 = vsel %vm709_vm5, %v4544_v28, %v863_v38  ;;  %v876_v48 = vsel %vm709_vm5, %v4543_v29, %v875_v45 }
 0x455   : > { %v872_v40 = vperm.slane %v864_v47, %v4917_v54  ;;  %v884_v49 = vperm.slane %v876_v48, %v4917_v54  ;;  %v885_v50 = vrot.slane %v880_v46, 4  ;;  %v887_v57 = vrot.slane %v868_v43, 4 }
 0x457   : > { %v899_v41 = vrot.slane %v872_v40, 4  ;;  %v897_v51 = vrot.slane %v884_v49, 4  ;;  %v886_v52 = vsel %vm709_vm5, %v885_v50, %v868_v43  ;;  %v888_v59 = vsel %vm709_vm5, %v880_v46, %v887_v57 }
 0x458   : > { %v896_v60 = vperm.slane %v888_v59, %v4926_v5  ;;  %v892_v25 = vperm.slane %v886_v52, %v4926_v5 }
 0x459   : > { %v898_v53 = vsel %vm709_vm5, %v897_v51, %v872_v40  ;;  %v900_v55 = vsel %vm709_vm5, %v884_v49, %v899_v41 }
 0x45a   : > { %v904_v42 = vperm.slane %v898_v53, %v4926_v5  ;;  %v911_v61 = vrot.slane %v896_v60, 4  ;;  %v919_v63 = vpack.c.bf16 %v896_v60, %v896_v60  ;;  %v908_v26 = vperm.slane %v900_v55, %v4926_v5 }
 0x45b   : > { %v909_v27 = vrot.slane %v892_v25, 4  ;;  %v917_v31 = vpack.c.bf16 %v892_v25, %v892_v25 }
 0x45c   : > { %v913_v56 = vrot.slane %v904_v42, 4  ;;  %v921_v58 = vpack.c.bf16 %v904_v42, %v904_v42  ;;  %v912_v62 = vsel %vm709_vm5, 0.0, %v911_v61  ;;  %v915_v28 = vrot.slane %v908_v26, 4 }
 0x45d   : > { %v920_v0 = vpack.c.bf16 %v912_v62, %v912_v62  ;;  %v910_v29 = vsel %vm709_vm5, 0.0, %v909_v27  ;;  %v923_v33 = vpack.c.bf16 %v908_v26, %v908_v26 }
 0x45e   : > { %v914_v37 = vsel %vm709_vm5, 0.0, %v913_v56  ;;  %v916_v30 = vsel %vm709_vm5, 0.0, %v915_v28  ;;  %v918_v32 = vpack.c.bf16 %v910_v29, %v910_v29 }
 0x45f   : > { %v922_v39 = vpack.c.bf16 %v914_v37, %v914_v37  ;;  %v924_v34 = vpack.c.bf16 %v916_v30, %v916_v30 }
 0x461   : > { %4545 = vxpose.binary.xlu1.c.b16.start.end [1/2] (short) (narrow) %v922_v39, %v921_v58, 16 }
 0x471   : > { %4554 = vxpose.binary.xlu1.c.b16.start.end [1/2] (short) (narrow) %v920_v0, %v919_v63, 16 }
 0x4bb   : > { %v1391_v1 = vpop.f32.mrf.mxu1 }
 0x4bc   : > { %v1452_v13 = vmul.f32 0.35355338, %v1391_v1 }
 0x4be   : > { %v1456_v19 = vadd.f32 %v1452_v13, %v620_v8 }
 0x4c0   : > { %v1460_v21 = vsel %vm1374_vm7, %v1456_v19, -inf }
 0x4c3   : > { %v1393_v2 = vpop.f32.mrf.mxu1  ;;  %v1410_v4 = vpop.f32.mrf.mxu2 }
 0x4c4   : > { %v1453_v6 = vmul.f32 0.35355338, %v1410_v4  ;;  %v1429_v7 = vpop.f32.mrf.mxu3 }
 0x4c5   : > { %v1454_v9 = vmul.f32 0.35355338, %v1429_v7 }
 0x4c6   : > { %v1457_v10 = vadd.f32 %v1453_v6, %v620_v8 }
 0x4c7   : > { %v1458_v12 = vadd.f32 %v1454_v9, %v620_v8 }
 0x4c8   : > { %v1463_v14 = vsel %vm1374_vm7, %v1457_v10, -inf }
 0x4c9   : > { %1464 = vmax.xlane.f32.xlu2 %v1463_v14  ;;  %v1466_v15 = vsel %vm1374_vm7, %v1458_v12, -inf }
 0x4ca   : > { %1467 = vmax.xlane.f32.xlu0 %v1466_v15 }
 0x4cb   : > { %v1412_v16 = vpop.f32.mrf.mxu2  ;;  %v1448_v17 = vpop.f32.mrf.mxu1 }
 0x4cc   : > { %v1431_v18 = vpop.f32.mrf.mxu3  ;;  %v1455_v20 = vmul.f32 0.35355338, %v1448_v17 }
 0x4ce   : > { %v1459_v23 = vadd.f32 %v1455_v20, %v620_v8 }
 0x4d0   : > { %v1469_v24 = vsel %vm1374_vm7, %v1459_v23, -inf }
 0x4d1   : > { %1461 = vmax.xlane.f32.xlu1 %v1460_v21 }
 0x4d3   : > { %v1450_v22 = vpop.f32.mrf.mxu1 }
 0x4d9   : > { %1470 = vmax.xlane.f32.xlu1 %v1469_v24 }
 0x4f2   : > { %4548 = vxpose.binary.xlu2.c.b16.start.end [1/2] (short) (narrow) %v918_v32, %v917_v31, 16 }
 0x4f3   : > { %4551 = vxpose.binary.xlu0.c.b16.start.end [1/2] (short) (narrow) %v924_v34, %v923_v33, 16 }
 0x50d   : > { %v4546_v35 = vpop.trf.xlu1 }
 0x50e   : > { %v1636_v61 = vrot.slane %v4546_v35, 4 }
 0x515   : > { %v4547_v36 = vpop.trf.xlu1 }
 0x516   : > { %v1664_v4 = vrot.slane %v4547_v36, 4 }
 0x51d   : > { %v4555_v38 = vpop.trf.xlu1 }
 0x525   : > { %v4556_v44 = vpop.trf.xlu1 }
 0x53c   : > { %v1465_v41 = vpop.xlane.xlu2 %1464 }
 0x53d   : > { %v1468_v45 = vpop.xlane.xlu0 %1467  ;;  %v1473_v53 = vsub.f32 %v1457_v10, %v1465_v41 }
 0x53e   : > { %v1474_v46 = vsub.f32 %v1458_v12, %v1468_v45 }
 0x53f   : > { %v1478_v42 = vmul.f32 1.442695, %v1473_v53 }
 0x540   : > { %v1480_v47 = vmul.f32 1.442695, %v1474_v46 }
 0x542   : > { %4688 = vpow2.f32 %v1480_v47 }
 0x544   : > { %v1462_v48 = vpop.xlane.xlu1 %1461 }
 0x545   : > { %v1472_v52 = vsub.f32 %v1456_v19, %v1462_v48 }
 0x547   : > { %v1476_v55 = vmul.f32 1.442695, %v1472_v52 }
 0x548   : > { %v5060_v43 = vpop.eup %4688 }
 0x549   : > { %v1490_v40 = vsel %vm1374_vm7, %v5060_v43, 0.0 }
 0x54a   : > { %1491 = vadd.xlane.f32.xlu1 %v1490_v40 }
 0x54c   : > { %v1471_v49 = vpop.xlane.xlu1 %1470 }
 0x54d   : > { %v1475_v50 = vsub.f32 %v1459_v23, %v1471_v49 }
 0x54f   : > { %v1482_v51 = vmul.f32 1.442695, %v1475_v50 }
 0x551   : > { %4690 = vpow2.f32 %v1482_v51 }
 0x552   : > { %4692 = vpow2.f32 %v1476_v55 }
 0x553   : > { %4694 = vpow2.f32 %v1478_v42 }
 0x557   : > { %v5064_v56 = vpop.eup %4690 }
 0x558   : > { %v1493_v57 = vsel %vm1374_vm7, %v5064_v56, 0.0  ;;  %v5068_v37 = vpop.eup %4692 }
 0x559   : > { %1494 = vadd.xlane.f32.xlu1 %v1493_v57  ;;  %v5070_v58 = vpop.eup %4694  ;;  %v1484_v39 = vsel %vm1374_vm7, %v5068_v37, 0.0 }
 0x55a   : > { %v1487_v59 = vsel %vm1374_vm7, %v5070_v58, 0.0 }
 0x563   : > { %1485 = vadd.xlane.f32.xlu2 %v1484_v39 }
 0x564   : > { %1488 = vadd.xlane.f32.xlu0 %v1487_v59 }
 0x593   : > { %v4549_v60 = vpop.trf.xlu2 }
 0x594   : > { %v1637_v62 = vsel %vm709_vm5, %v1636_v61, %v4549_v60 }
 0x595   : > { %v1641_v63 = vperm.slane %v1637_v62, %v4917_v54 }
 0x597   : > { %v1650_v7 = vrot.slane %v1641_v63, 4 }
 0x59b   : > { %v4550_v2 = vpop.trf.xlu2 }
 0x59c   : > { %v1665_v9 = vsel %vm709_vm5, %v1664_v4, %v4550_v2 }
 0x59d   : > { %v1669_v13 = vperm.slane %v1665_v9, %v4917_v54 }
 0x59f   : > { %v4552_v0 = vpop.trf.xlu0  ;;  %v1678_v20 = vrot.slane %v1669_v13, 4 }
 0x5a0   : > { %v1642_v1 = vrot.slane %v4552_v0, 4 }
 0x5a2   : > { %v1643_v6 = vsel %vm709_vm5, %v1642_v1, %v4555_v38 }
 0x5a3   : > { %v1647_v8 = vperm.slane %v1643_v6, %v4917_v54 }
 0x5a5   : > { %v1648_v10 = vrot.slane %v1647_v8, 4  ;;  %v1651_v12 = vsel %vm709_vm5, %v1647_v8, %v1650_v7 }
 0x5a6   : > { %v1659_v15 = vperm.slane %v1651_v12, %v4926_v5 }
 0x5a7   : > { %v1649_v14 = vsel %vm709_vm5, %v1648_v10, %v1641_v63  ;;  %v4553_v16 = vpop.trf.xlu0 }
 0x5a8   : > { %v1670_v17 = vrot.slane %v4553_v16, 4  ;;  %v1655_v18 = vperm.slane %v1649_v14, %v4926_v5  ;;  %v1662_v22 = vrot.slane %v1659_v15, 4  ;;  %v1712_v28 = vshrl.u32 %v1659_v15, 16 }
 0x5aa   : > { %v1671_v19 = vsel %vm709_vm5, %v1670_v17, %v4556_v44  ;;  %v1660_v25 = vrot.slane %v1655_v18, 4  ;;  %v1663_v29 = vsel %vm709_vm5, 0, %v1662_v22  ;;  %v1696_v35 = vshrl.u32 %v1655_v18, 16 }
 0x5ab   : > { %v1675_v21 = vperm.slane %v1671_v19, %v4917_v54  ;;  %v1720_v47 = vshrl.u32 %v1663_v29, 16 }
 0x5ac   : > { %v1661_v34 = vsel %vm709_vm5, 0, %v1660_v25 }
 0x5ad   : > { %v1676_v23 = vrot.slane %v1675_v21, 4  ;;  %v1679_v24 = vsel %vm709_vm5, %v1675_v21, %v1678_v20  ;;  %v1704_v50 = vshrl.u32 %v1661_v34, 16 }
 0x5ae   : > { %v1687_v26 = vperm.slane %v1679_v24, %v4926_v5 }
 0x5af   : > { %v1677_v27 = vsel %vm709_vm5, %v1676_v23, %v1669_v13 }
 0x5b0   : > { %v1683_v30 = vperm.slane %v1677_v27, %v4926_v5  ;;  %v1710_v31 = vpack.i.b16 %v1687_v26, %v1659_v15  ;;  %v1713_v32 = vshrl.u32 %v1687_v26, 16  ;;  %v1690_v33 = vrot.slane %v1687_v26, 4 }
 0x5b2   : > { %v1714_v36 = vpack.i.b16 %v1713_v32, %v1712_v28  ;;  %v1691_v38 = vsel %vm709_vm5, 0, %v1690_v33  ;;  %v1688_v44 = vrot.slane %v1683_v30, 4  ;;  %v1694_v45 = vpack.i.b16 %v1683_v30, %v1655_v18 }
 0x5b3   : > { %v1718_v46 = vpack.i.b16 %v1691_v38, %v1663_v29  ;;  %v1721_v48 = vshrl.u32 %v1691_v38, 16  ;;  %v1697_v40 = vshrl.u32 %v1683_v30, 16 }
 0x5b4   : > { %4563 = vxpose.binary.xlu0.c.b16.start.end [1/2] (short) (narrow) %v1714_v36, %v1710_v31, 16  ;;  %v1689_v49 = vsel %vm709_vm5, 0, %v1688_v44 }
 0x5b5   : > { %v1722_v41 = vpack.i.b16 %v1721_v48, %v1720_v47  ;;  %v1702_v51 = vpack.i.b16 %v1689_v49, %v1661_v34  ;;  %v1705_v52 = vshrl.u32 %v1689_v49, 16  ;;  %v1698_v53 = vpack.i.b16 %v1697_v40, %v1696_v35 }
 0x5b7   : > { %4557 = vxpose.binary.xlu1.c.b16.start.end [1/2] (short) (narrow) %v1722_v41, %v1718_v46, 16  ;;  %v1706_v55 = vpack.i.b16 %v1705_v52, %v1704_v50 }
 0x5b9   : > { %4560 = vxpose.binary.xlu2.c.b16.start.end [1/2] (short) (narrow) %v1706_v55, %v1702_v51, 16 }
 0x5bd   : > { %v1492_v42 = vpop.xlane.xlu1 %1491 }
 0x5be   : > { %4696 = vrcp.f32 %v1492_v42 }
 0x5c4   : > { %v4697_v57 = vpop.eup %4696 }
 0x5c5   : > { %v1502_v39 = vmul.f32 %v4697_v57, %v5060_v43 }
 0x5c7   : > { %v1506_v59 = vpack.c.bf16 %v1502_v39, %v1502_v39 }
 0x5c9   : > { %4566 = vxpose.binary.xlu2.c.b16.start.end [1/2] (short) (narrow) %v1698_v53, %v1694_v45, 16  ;;  %v1946_v60 = vsel %vm1374_vm7, %v1506_v59, 0 }
 0x5ca   : > { %1955 = vmatpush.bf16.xpose.msrb.mxu0 %v1946_v60 }
 0x5cc   : > { %v1495_v61 = vpop.xlane.xlu1 %1494 }
 0x5cd   : > { %4698 = vrcp.f32 %v1495_v61 }
 0x5d3   : > { %v4699_v62 = vpop.eup %4698 }
 0x5d4   : > { %v1503_v63 = vmul.f32 %v4699_v62, %v5064_v56 }
 0x5d6   : > { %v1486_v0 = vpop.xlane.xlu2 %1485  ;;  %v1507_v1 = vpack.c.bf16 %v1503_v63, %v1503_v63 }
 0x5d7   : > { %4700 = vrcp.f32 %v1486_v0  ;;  %v1489_v2 = vpop.xlane.xlu0 %1488 }
 0x5d8   : > { %4702 = vrcp.f32 %v1489_v2  ;;  %v1965_v4 = vsel %vm1374_vm7, %v1507_v1, 0 }
 0x5d9   : > { %1974 = vmatpush.bf16.xpose.msra.mxu1 %v1965_v4 }
 0x5dd   : > { %v4701_v6 = vpop.eup %4700 }
 0x5de   : > { %v4703_v43 = vpop.eup %4702  ;;  %v1500_v7 = vmul.f32 %v4701_v6, %v5068_v37 }
 0x5df   : > { %v1501_v8 = vmul.f32 %v4703_v43, %v5070_v58 }
 0x5e0   : > { %v1504_v9 = vpack.c.bf16 %v1500_v7, %v1500_v7 }
 0x5e1   : > { %v1505_v10 = vpack.c.bf16 %v1501_v8, %v1501_v8 }
 0x5e2   : > { %v1908_v12 = vsel %vm1374_vm7, %v1504_v9, 0 }
 0x5e3   : > { %1917 = vmatpush.bf16.xpose.msrb.mxu2 %v1908_v12  ;;  %v1927_v56 = vsel %vm1374_vm7, %v1505_v10, 0 }
 0x5e4   : > { %1936 = vmatpush.bf16.xpose.msrb.mxu3 %v1927_v56 }
 0x65a   : > { %v4561_v13 = vpop.trf.xlu2 }
 0x660   : > { %v4564_v15 = vpop.trf.xlu0 }
 0x661   : > { %v1852_v19 = vrot.slane %v4564_v15, 4 }
 0x662   : > { %v4562_v14 = vpop.trf.xlu2 }
 0x663   : > { %v4558_v16 = vpop.trf.xlu1 }
 0x664   : > { %v1858_v17 = vrot.slane %v4558_v16, 4 }
 0x666   : > { %v1859_v18 = vsel %vm709_vm5, %v1858_v17, %v4561_v13 }
 0x667   : > { %v1863_v37 = vperm.slane %v1859_v18, %v4917_v54 }
 0x668   : > { %v4565_v25 = vpop.trf.xlu0 }
 0x669   : > { %v1864_v22 = vrot.slane %v1863_v37, 4  ;;  %v1872_v28 = vrot.slane %v4565_v25, 4 }
 0x66a   : > { %v4567_v20 = vpop.trf.xlu2 }
 0x66b   : > { %v1853_v58 = vsel %vm709_vm5, %v1852_v19, %v4567_v20  ;;  %v4559_v21 = vpop.trf.xlu1 }
 0x66c   : > { %v1857_v23 = vperm.slane %v1853_v58, %v4917_v54  ;;  %v1878_v24 = vrot.slane %v4559_v21, 4 }
 0x66e   : > { %v1865_v26 = vsel %vm709_vm5, %v1864_v22, %v1857_v23  ;;  %v1879_v27 = vsel %vm709_vm5, %v1878_v24, %v4562_v14 }
 0x66f   : > { %v1883_v29 = vperm.slane %v1879_v27, %v4917_v54  ;;  %v1869_v30 = vperm.slane %v1865_v26, %v4926_v5 }
 0x671   : > { %v1884_v33 = vrot.slane %v1883_v29, 4  ;;  %v1870_v35 = vrot.slane %v1869_v30, 4  ;;  %v1895_v44 = vshrl.u32 %v1869_v30, 16 }
 0x672   : > { %v4568_v31 = vpop.trf.xlu2 }
 0x673   : > { %v1873_v32 = vsel %vm709_vm5, %v1872_v28, %v4568_v31  ;;  %v1871_v47 = vsel %vm709_vm5, 0, %v1870_v35 }
 0x674   : > { %v1877_v34 = vperm.slane %v1873_v32, %v4917_v54  ;;  %v1901_v41 = vshrl.u32 %v1871_v47, 16 }
 0x676   : > { %v1885_v36 = vsel %vm709_vm5, %v1884_v33, %v1877_v34 }
 0x677   : > { %v1889_v38 = vperm.slane %v1885_v36, %v4926_v5 }
 0x679   : > { %v1894_v45 = vpack.i.b16 %v1889_v38, %v1869_v30  ;;  %v1896_v46 = vshrl.u32 %v1889_v38, 16  ;;  %v1890_v48 = vrot.slane %v1889_v38, 4 }
 0x67b   : > { %4328 = vmatmul.msk.bf16.vlgmr.msrb.gmra.mxu2 %vm1374_vm7, %v1894_v45  ;;  %v1897_v40 = vpack.i.b16 %v1896_v46, %v1895_v44  ;;  %v1891_v49 = vsel %vm709_vm5, 0, %v1890_v48 }
 0x67c   : > { %v1900_v50 = vpack.i.b16 %v1891_v49, %v1871_v47  ;;  %v1902_v51 = vshrl.u32 %v1891_v49, 16 }
 0x67d   : > { %4329 = vmatmul.msk.bf16.vlgmr.msrb.gmra.mxu3 %vm1374_vm7, %v1897_v40 }
 0x67e   : > { %v1903_v52 = vpack.i.b16 %v1902_v51, %v1901_v41  ;;  %4330 = vmatmul.msk.bf16.vlgmr.msrb.gmra.mxu0 %vm1374_vm7, %v1900_v50 }
 0x680   : > { %4331 = vmatmul.msk.bf16.vlgmr.msra.gmra.mxu1 %vm1374_vm7, %v1903_v52 }
 0x6fb   : > { %v1957_v53 = vpop.f32.mrf.mxu0 }
 0x6fd   : > { %v1976_v55 = vpop.f32.mrf.mxu1 }
 0x6fe   : > { %v1919_v42 = vpop.f32.mrf.mxu2 }
 0x6ff   : > { %v4569_v57 = vpack.i.bf16 %v1919_v42, %v1957_v53 }
 0x700   : > { %v1938_v39 = vpop.f32.mrf.mxu3 }
 0x701   : > { %v4576_v59 = vpack.i.bf16 %v1938_v39, %v1976_v55  ;;  %4570 = vxpose.xlu0.b32.start.end [1/1] (short) (narrow) %v4569_v57, 8 }
 0x703   : > { %v1959_v60 = vpop.f32.mrf.mxu0  ;;  %4577 = vxpose.xlu1.b32.start.end [1/1] (short) (narrow) %v4576_v59, 8 }
 0x705   : > { %v1978_v61 = vpop.f32.mrf.mxu1 }
 0x706   : > { %v1921_v62 = vpop.f32.mrf.mxu2 }
 0x708   : > { %v1940_v63 = vpop.f32.mrf.mxu3 }
 0x7a5   : > { %v4571_v0 = vpop.trf.xlu0 }
 0x7a6   : > { %v4575_v1 = vunpack.i.h.bf16 %v4571_v0  ;;  %v4572_v2 = vunpack.i.l.bf16 %v4571_v0 }
 0x7a7   : > { %v4578_v4 = vpop.trf.xlu1 }
 0x7a8   : > { %v2110_v6 = vrot.slane %v4575_v1, 4  ;;  %v2108_v43 = vrot.slane %v4572_v2, 4  ;;  %v4582_v7 = vunpack.i.h.bf16 %v4578_v4  ;;  %v4579_v8 = vunpack.i.l.bf16 %v4578_v4 }
 0x7aa   : > { %v2109_v9 = vsel %vm709_vm5, %v2108_v43, %v4575_v1  ;;  %v2111_v10 = vsel %vm709_vm5, %v4572_v2, %v2110_v6  ;;  %v2122_v12 = vrot.slane %v4582_v7, 4  ;;  %v2120_v14 = vrot.slane %v4579_v8, 4 }
 0x7ab   : > { %v2115_v56 = vperm.slane %v2109_v9, %v4917_v54  ;;  %v2119_v13 = vperm.slane %v2111_v10, %v4917_v54  ;;  %v4461_v9 = vld [vmem:[%s5602_s7 + $0x8] sm:$0xff]  ;;  %v4460_v10 = vld [vmem:[%s5602_s7] sm:$0xff] }
 0x7ac   : > { %v2123_v15 = vsel %vm709_vm5, %v4579_v8, %v2122_v12  ;;  %v2121_v18 = vsel %vm709_vm5, %v2120_v14, %v4582_v7  ;;  %2265 = vmatpush.bf16.msra.mxu2 %v4461_v9 }
 0x7ad   : > { %v2134_v16 = vrot.slane %v2115_v56, 4  ;;  %v2146_v17 = vrot.slane %v2119_v13, 4  ;;  %v2131_v19 = vperm.slane %v2123_v15, %v4917_v54  ;;  %v2127_v37 = vperm.slane %v2121_v18, %v4917_v54  ;;  %v4668_v18 = vld [vmem:[%s5603_s8] ss:$0 sm:$0xff] }
 0x7af   : > { %v2144_v20 = vrot.slane %v2131_v19, 4  ;;  %v2147_v58 = vsel %vm709_vm5, %v2131_v19, %v2146_v17  ;;  %v2132_v21 = vrot.slane %v2127_v37, 4  ;;  %v2135_v22 = vsel %vm709_vm5, %v2127_v37, %v2134_v16 }
 0x7b0   : > { %v2155_v23 = vperm.slane %v2147_v58, %v4926_v5  ;;  %v2143_v24 = vperm.slane %v2135_v22, %v4926_v5  ;;  %2266 = vmatpush.bf16.msra.mxu2 %v4460_v10 }
 0x7b1   : > { %v2145_v25 = vsel %vm709_vm5, %v2144_v20, %v2119_v13  ;;  %v2133_v26 = vsel %vm709_vm5, %v2132_v21, %v2115_v56 }
 0x7b2   : > { %v2151_v27 = vperm.slane %v2145_v25, %v4926_v5  ;;  %v2162_v28 = vrot.slane %v2155_v23, 4  ;;  %v2139_v29 = vperm.slane %v2133_v26, %v4926_v5  ;;  %v2158_v30 = vrot.slane %v2143_v24, 4 }
 0x7b4   : > { %v2160_v31 = vrot.slane %v2151_v27, 4  ;;  %v2163_v32 = vsel %vm709_vm5, 0.0, %v2162_v28  ;;  %v2175_v33 = vsel %vm709_vm5, %v2162_v28, %v2151_v27  ;;  %v2159_v34 = vsel %vm709_vm5, 0.0, %v2158_v30  ;;  %v4463_v27 = vld [vmem:[%s5606_s11 + $0x8] sm:$0xff]  ;;  %v4467_v28 = vld [vmem:[%s5608_s13 + $0x18] sm:$0xff] }
 0x7b5   : > { %v2156_v35 = vrot.slane %v2139_v29, 4  ;;  %v2164_v36 = vsel %vm709_vm5, %v2158_v30, %v2139_v29  ;;  %v2179_v38 = vperm.slane %v2175_v33, %v4917_v54  ;;  %v2169_v46 = vrot.slane %v2159_v34, 4  ;;  %2335 = vmatpush.bf16.msra.mxu3 %v4463_v27  ;;  %2388 = vmatpush.bf16.msra.mxu0 %v4467_v28 }
 0x7b6   : > { %v2161_v44 = vsel %vm709_vm5, 0.0, %v2160_v31  ;;  %v2168_v45 = vperm.slane %v2164_v36, %v4917_v54  ;;  %v2180_v47 = vrot.slane %v2163_v32, 4  ;;  %v4466_v31 = vld [vmem:[%s5608_s13 + $0x10] sm:$0xff] }
 0x7b7   : > { %v2157_v48 = vsel %vm709_vm5, 0.0, %v2156_v35  ;;  %v2200_v40 = vrot.slane %v2179_v38, 4 }
 0x7b8   : > { %v2170_v49 = vsel %vm709_vm5, %v2169_v46, %v2157_v48  ;;  %v2181_v50 = vsel %vm709_vm5, %v2180_v47, %v2161_v44  ;;  %v2188_v41 = vrot.slane %v2168_v45, 4  ;;  %v4670_v48 = vld [vmem:[%s5605_s10] ss:$0 sm:$0xff] }
 0x7b9   : > { %v2174_v51 = vperm.slane %v2170_v49, %v4917_v54  ;;  %v2185_v52 = vperm.slane %v2181_v50, %v4917_v54  ;;  %2389 = vmatpush.bf16.msra.mxu0 %v4466_v31 }
 0x7bb   : > { %v2189_v53 = vsel %vm709_vm5, %v2174_v51, %v2188_v41  ;;  %v2201_v55 = vsel %vm709_vm5, %v2185_v52, %v2200_v40  ;;  %v2186_v42 = vrot.slane %v2174_v51, 4  ;;  %v2198_v57 = vrot.slane %v2185_v52, 4  ;;  %v4465_v41 = vld [vmem:[%s5608_s13 + $0x8] sm:$0xff]  ;;  %v4464_v51 = vld [vmem:[%s5608_s13] sm:$0xff] }
 0x7bc   : > { %v2197_v39 = vperm.slane %v2189_v53, %v4926_v5  ;;  %v2209_v59 = vperm.slane %v2201_v55, %v4926_v5  ;;  %v4671_v52 = vld [vmem:[%s5607_s12] ss:$0 sm:$0xff] }
 0x7bd   : > { %v2187_v60 = vsel %vm709_vm5, %v2186_v42, %v2168_v45  ;;  %v2199_v61 = vsel %vm709_vm5, %v2198_v57, %v2179_v38  ;;  %v4669_v45 = vld [vmem:[%s5604_s9] ss:$0 sm:$0xff]  ;;  %2390 = vmatpush.bf16.msra.mxu0 %v4465_v41 }
 0x7be   : > { %v2216_v62 = vrot.slane %v2197_v39, 4  ;;  %v2214_v63 = vrot.slane %v2209_v59, 4  ;;  %v2193_v0 = vperm.slane %v2187_v60, %v4926_v5  ;;  %v2205_v1 = vperm.slane %v2199_v61, %v4926_v5 }
 0x7c0   : > { %v2217_v2 = vsel %vm709_vm5, %v2209_v59, %v2216_v62  ;;  %v2215_v4 = vsel %vm709_vm5, %v2214_v63, %v2197_v39  ;;  %v2210_v6 = vrot.slane %v2205_v1, 4  ;;  %v2212_v43 = vrot.slane %v2193_v0, 4  ;;  %v4672_v59 = vld [vmem:[%s5609_s14] ss:$0 sm:$0xff] }
 0x7c1   : > { %2227 = vrot.lane.b32.xlu1 %v2217_v2, %s5620_s22  ;;  %2223 = vrot.lane.b32.xlu0 %v2215_v4, %s5619_s2 }
 0x7c2   : > { %v2213_v7 = vsel %vm709_vm5, %v2205_v1, %v2212_v43  ;;  %v2211_v8 = vsel %vm709_vm5, %v2210_v6, %v2193_v0  ;;  %2391 = vmatpush.bf16.msra.mxu0 %v4464_v51 }
 0x7c3   : > { %2219 = vrot.lane.b32.xlu2 %v2213_v7, %s5618_s23  ;;  %v4469_v7 = vld [vmem:[%s5600_s5 + $0x18] sm:$0xff]  ;;  %s614_s23 = scalar_lea.vmem %s5614_s19, %s4856_s20 }
 0x7c4   : > { %2464 = vmatpush.bf16.msrb.mxu1 %v4469_v7 }
 0x81d   : > { %v2220_v12 = vpop.permute.xlu2 %2219 }
 0x81e   : > { %v2230_v56 = vsel %vm1374_vm7, %v2211_v8, %v2220_v12  ;;  %v4468_v8 = vld [vmem:[%s5600_s5 + $0x10] sm:$0xff] }
 0x81f   : > { %2465 = vmatpush.bf16.msrb.mxu1 %v4468_v8 }
 0x833   : > { %v2228_v13 = vpop.permute.xlu1 %2227  ;;  %v2224_v14 = vpop.permute.xlu0 %2223 }
 0x834   : > { %v2232_v15 = vsel %vm2231_vm8, %v2230_v56, %v2224_v14 }
 0x835   : > { %v2234_v16 = vsel %vm2233_vm9, %v2232_v15, %v2228_v13 }
 0x836   : > { %v2235_v17 = vpack.c.bf16 %v2234_v16, %v2234_v16 }
 0x838   : > { %4340 = vmatmul.msk.bf16.vlgmr.msra.gmra.mxu2 %vm623_vm0, %v2235_v17 }
 0x8bb   : > { %v2268_v19 = vpop.f32.mrf.mxu2 }
 0x8bc   : > { %v2269_v37 = vadd.f32 %v4668_v18, %v2268_v19  ;;  %v4673_v18 = vld [vmem:[%s5629_s21 + $0x1] ss:$0 sm:$0xff] }
 0x8be   : > { %v2272_v20 = vadd.f32 %v2269_v37, %v4865_v3  ;;  %v4462_v3 = vld [vmem:[%s5606_s11] sm:$0xff] }
 0x8bf   : > { %2336 = vmatpush.bf16.msra.mxu3 %v4462_v3 }
 0x8c0   : > { %v2275_v58 = vsel %vm623_vm0, %v2272_v20, 0.0 }
 0x8c1   : > { %2276 = vadd.xlane.f32.xlu1 %v2275_v58 }
 0x8c3   : > { %v2270_v21 = vpop.f32.mrf.mxu2 }
 0x934   : > { %v2277_v22 = vpop.xlane.xlu1 %2276 }
 0x935   : > { %v2278_v23 = vmul.f32 %v2277_v22, %v4869_v11 }
 0x937   : > { %v2279_v24 = vsub.f32 %v2272_v20, %v2278_v23  ;;  %v4675_v23 = vld [vmem:[%s5601_s6 + $0x1] ss:$0 sm:$0xff] }
 0x939   : > { %v2280_v25 = vmul.f32 %v2279_v24, %v2279_v24 }
 0x93b   : > { %v2281_v26 = vsel %vm623_vm0, %v2280_v25, 0.0 }
 0x93c   : > { %2282 = vadd.xlane.f32.xlu2 %v2281_v26 }
 0x9af   : > { %v2283_v29 = vpop.xlane.xlu2 %2282 }
 0x9b0   : > { %v2284_v30 = vmul.f32 %v2283_v29, %v4869_v11 }
 0x9b2   : > { %v2285_v32 = vadd.f32 1e-05, %v2284_v30 }
 0x9b4   : > { %4704 = vrsqrt.f32 %v2285_v32  ;;  %vm2292_vm11 = vweird.f32 %v2285_v32 }
 0x9ba   : > { %v4705_v33 = vpop.eup %4704 }
 0x9bb   : > { %v2287_v34 = vmul.f32 %v4705_v33, %v2285_v32  ;;  %vm2293_vm10 = vweird.f32 %v4705_v33 }
 0x9bc   : > { %vm2294_vm12 = vmor %vm2292_vm11, %vm2293_vm10 }
 0x9bd   : > { %v2288_v35 = vmul.f32 %v4705_v33, %v2287_v34 }
 0x9bf   : > { %v2289_v36 = vmul.f32 0.5, %v2288_v35 }
 0x9c1   : > { %v2290_v38 = vsub.f32 1.5, %v2289_v36 }
 0x9c3   : > { %v2291_v44 = vmul.f32 %v4705_v33, %v2290_v38 }
 0x9c5   : > { %v2295_v46 = vsel %vm2294_vm12, %v4705_v33, %v2291_v44 }
 0x9c6   : > { %v2296_v47 = vmul.f32 %v2295_v46, %v2279_v24 }
 0x9c8   : > { %v2300_v40 = vmul.f32 %v4669_v45, %v2296_v47 }
 0x9ca   : > { %v2304_v49 = vadd.f32 %v4670_v48, %v2300_v40 }
 0x9cc   : > { %v2305_v50 = vpack.c.bf16 %v2304_v49, %v2304_v49 }
 0x9ce   : > { %4349 = vmatmul.msk.bf16.vlgmr.msra.gmra.mxu3 %vm623_vm0, %v2305_v50 }
 0xa51   : > { %v2338_v53 = vpop.f32.mrf.mxu3 }
 0xa52   : > { %v2339_v55 = vadd.f32 %v4671_v52, %v2338_v53 }
 0xa54   : > { %v2342_v42 = vmax.f32 %v2339_v55, 0.0 }
 0xa56   : > { %v2343_v57 = vpack.c.bf16 %v2342_v42, %v2342_v42 }
 0xa58   : > { %4366 = vmatmul.msk.bf16.vlgmr.msra.gmra.mxu0 %vm2380_vm13, %v2343_v57 }
 0xa59   : > { %v2340_v39 = vpop.f32.mrf.mxu3 }
 0xad5   : > { %v2393_v60 = vpop.f32.mrf.mxu0 }
 0xad6   : > { %v2394_v61 = vadd.f32 %v4672_v59, %v2393_v60 }
 0xad8   : > { %v5215_v62 = vadd.f32 %v2394_v61, %v2272_v20  ;;  %v4674_v20 = vld [vmem:[%s5599_s4 + $0x1] ss:$0 sm:$0xff] }
 0xada   : > { %v2402_v63 = vsel %vm623_vm0, %v5215_v62, 0.0 }
 0xadb   : > { %2403 = vadd.xlane.f32.xlu0 %v2402_v63 }
 0xadd   : > { %v2395_v0 = vpop.f32.mrf.mxu0 }
 0xb4e   : > { %v2404_v1 = vpop.xlane.xlu0 %2403 }
 0xb4f   : > { %v2405_v2 = vmul.f32 %v2404_v1, %v4869_v11 }
 0xb51   : > { %v2406_v4 = vsub.f32 %v5215_v62, %v2405_v2 }
 0xb53   : > { %v2407_v6 = vmul.f32 %v2406_v4, %v2406_v4 }
 0xb55   : > { %v2408_v43 = vsel %vm623_vm0, %v2407_v6, 0.0 }
 0xb56   : > { %2409 = vadd.xlane.f32.xlu1 %v2408_v43 }
 0xbc9   : > { %v2410_v9 = vpop.xlane.xlu1 %2409 }
 0xbca   : > { %v2411_v10 = vmul.f32 %v2410_v9, %v4869_v11 }
 0xbcc   : > { %v2412_v12 = vadd.f32 1e-05, %v2411_v10 }
 0xbce   : > { %4706 = vrsqrt.f32 %v2412_v12  ;;  %vm2419_vm15 = vweird.f32 %v2412_v12 }
 0xbd4   : > { %v4707_v56 = vpop.eup %4706 }
 0xbd5   : > { %v2414_v13 = vmul.f32 %v4707_v56, %v2412_v12  ;;  %vm2420_vm14 = vweird.f32 %v4707_v56 }
 0xbd6   : > { %vm2421_vm1 = vmor %vm2419_vm15, %vm2420_vm14 }
 0xbd7   : > { %v2415_v14 = vmul.f32 %v4707_v56, %v2414_v13 }
 0xbd9   : > { %v2416_v15 = vmul.f32 0.5, %v2415_v14 }
 0xbdb   : > { %v2417_v16 = vsub.f32 1.5, %v2416_v15 }
 0xbdd   : > { %v2418_v17 = vmul.f32 %v4707_v56, %v2417_v16 }
 0xbdf   : > { %v2422_v19 = vsel %vm2421_vm1, %v4707_v56, %v2418_v17 }
 0xbe0   : > { %v2423_v37 = vmul.f32 %v2422_v19, %v2406_v4 }
 0xbe2   : > { %v2427_v58 = vmul.f32 %v4673_v18, %v2423_v37 }
 0xbe4   : > { %v2431_v21 = vadd.f32 %v4674_v20, %v2427_v58 }
 0xbe6   : > { %v2432_v22 = vpack.c.bf16 %v2431_v21, %v2431_v21 }
 0xbe8   : > { %4382 = vmatmul.msk.bf16.vlgmr.msrb.gmra.mxu1 %vm623_vm0, %v2432_v22 }
 0xc65   : > { %v2467_v24 = vpop.f32.mrf.mxu1 }
 0xc66   : > { %v5239_v25 = vadd.f32 %v4675_v23, %v2467_v24 }
 0xc68   : > { %2475 = vrot.lane.b32.xlu0 %v5239_v25, %s4738_s24  ;;  %2478 = vrot.lane.b32.xlu1 %v5239_v25, %s4740_s3  ;;  %s5633_s24 = smov 24   ;;  %s5635_s3 = smov 8  }
 0xc69   : > { %2472 = vrot.lane.b32.xlu2 %v5239_v25, %s4739_s25  ;;  %s5634_s25 = smov 16  }
 0xc6d   : > { %v2469_v26 = vpop.f32.mrf.mxu1 }
 0xcc3   : > { %v5247_v27 = vpop.permute.xlu2 %2472 }
 0xcc4   : > { %v4593_v3 = vpack.i.bf16 %v5239_v25, %v5247_v27 }
 0xcc6   : > { %4594 = vrot.lane.b32.xlu1 %v4593_v3, %s5631_s28  ;;  %4584 = vrot.lane.b32.xlu2 %v4593_v3, %s5632_s29 }
 0xcda   : > { %v5253_v28 = vpop.permute.xlu0 %2475  ;;  %v5255_v29 = vpop.permute.xlu1 %2478 }
 0xcdb   : > { %v4588_v30 = vpack.i.bf16 %v5253_v28, %v5255_v29 }
 0xcdd   : > { %4589 = vrot.lane.b32.xlu0 %v4588_v30, %s5632_s29  ;;  %4599 = vrot.lane.b32.xlu2 %v4588_v30, %s5631_s28 }
 0xd20   : > { %v4585_v31 = vpop.permute.xlu2 %4584 }
 0xd21   : > { %v4587_v61 = vunpack.i.h.bf16 %v4585_v31  ;;  %v4586_v63 = vunpack.i.l.bf16 %v4585_v31 }
 0xd23   : > { %v2559_v1 = vrot.slane %v4587_v61, 4  ;;  %v2571_v2 = vrot.slane %v4586_v63, 4 }
 0xd37   : > { %v4600_v33 = vpop.permute.xlu2 %4599 }
 0xd38   : > { %v4595_v32 = vpop.permute.xlu1 %4594  ;;  %v4602_v36 = vunpack.i.h.bf16 %v4600_v33  ;;  %v4601_v38 = vunpack.i.l.bf16 %v4600_v33 }
 0xd39   : > { %v4597_v34 = vunpack.i.h.bf16 %v4595_v32  ;;  %v4596_v35 = vunpack.i.l.bf16 %v4595_v32 }
 0xd3a   : > { %v2633_v46 = vrot.slane %v4602_v36, 4  ;;  %v2645_v47 = vrot.slane %v4601_v38, 4 }
 0xd3b   : > { %v2635_v44 = vrot.slane %v4597_v34, 4  ;;  %v2647_v45 = vrot.slane %v4596_v35, 4 }
 0xd3c   : > { %v2634_v48 = vsel %vm709_vm5, %v2633_v46, %v4597_v34  ;;  %v2646_v49 = vsel %vm709_vm5, %v2645_v47, %v4596_v35 }
 0xd3d   : > { %v2636_v40 = vsel %vm709_vm5, %v4602_v36, %v2635_v44  ;;  %v2648_v50 = vsel %vm709_vm5, %v4601_v38, %v2647_v45  ;;  %v2640_v41 = vperm.slane %v2634_v48, %v4917_v54  ;;  %v2652_v52 = vperm.slane %v2646_v49, %v4917_v54 }
 0xd3e   : > { %v2644_v51 = vperm.slane %v2636_v40, %v4917_v54  ;;  %v2656_v42 = vperm.slane %v2648_v50, %v4917_v54 }
 0xd3f   : > { %v2659_v53 = vrot.slane %v2640_v41, 4  ;;  %v2657_v57 = vrot.slane %v2652_v52, 4 }
 0xd40   : > { %v2671_v55 = vrot.slane %v2644_v51, 4  ;;  %v2669_v24 = vrot.slane %v2656_v42, 4 }
 0xd41   : > { %v5273_v59 = vsel %vm709_vm5, %v2652_v52, %v2659_v53  ;;  %v5276_v60 = vsel %vm709_vm5, %v2657_v57, %v2640_v41 }
 0xd42   : > { %v5270_v39 = vsel %vm709_vm5, %v2656_v42, %v2671_v55  ;;  %v2670_v44 = vsel %vm709_vm5, %v2669_v24, %v2644_v51 }
 0xd43   : > { %v2676_v48 = vperm.slane %v2670_v44, %v4926_v5 }
 0xd45   : > { %v2685_v49 = vrot.slane %v2676_v48, 4  ;;  %v2693_v53 = vpack.c.bf16 %v2676_v48, %v2676_v48 }
 0xd47   : > { %v2686_v41 = vsel %vm709_vm5, 0.0, %v2685_v49 }
 0xd48   : > { %v2694_v55 = vpack.c.bf16 %v2686_v41, %v2686_v41 }
 0xd4f   : > { %v4590_v0 = vpop.permute.xlu0 %4589 }
 0xd50   : > { %v4592_v4 = vunpack.i.h.bf16 %v4590_v0  ;;  %v4591_v6 = vunpack.i.l.bf16 %v4590_v0 }
 0xd52   : > { %v2557_v43 = vrot.slane %v4592_v4, 4  ;;  %v2560_v7 = vsel %vm709_vm5, %v4592_v4, %v2559_v1  ;;  %v2569_v8 = vrot.slane %v4591_v6, 4  ;;  %v2572_v9 = vsel %vm709_vm5, %v4591_v6, %v2571_v2 }
 0xd53   : > { %v2568_v10 = vperm.slane %v2560_v7, %v4917_v54  ;;  %v2580_v12 = vperm.slane %v2572_v9, %v4917_v54 }
 0xd54   : > { %v2558_v56 = vsel %vm709_vm5, %v2557_v43, %v4587_v61  ;;  %v2570_v13 = vsel %vm709_vm5, %v2569_v8, %v4586_v63 }
 0xd55   : > { %v2576_v14 = vperm.slane %v2570_v13, %v4917_v54  ;;  %v2593_v15 = vrot.slane %v2580_v12, 4  ;;  %v2595_v16 = vrot.slane %v2568_v10, 4  ;;  %v2564_v17 = vperm.slane %v2558_v56, %v4917_v54 }
 0xd57   : > { %v2581_v18 = vrot.slane %v2576_v14, 4  ;;  %v2596_v19 = vsel %vm709_vm5, %v2580_v12, %v2595_v16  ;;  %v2594_v37 = vsel %vm709_vm5, %v2593_v15, %v2568_v10  ;;  %v2583_v3 = vrot.slane %v2564_v17, 4 }
 0xd58   : > { %v2604_v20 = vperm.slane %v2596_v19, %v4926_v5  ;;  %v2600_v58 = vperm.slane %v2594_v37, %v4926_v5 }
 0xd59   : > { %v2582_v21 = vsel %vm709_vm5, %v2581_v18, %v2564_v17  ;;  %v2584_v47 = vsel %vm709_vm5, %v2576_v14, %v2583_v3 }
 0xd5a   : > { %v2611_v22 = vrot.slane %v2604_v20, 4  ;;  %v2609_v23 = vrot.slane %v2600_v58, 4  ;;  %v2588_v26 = vperm.slane %v2582_v21, %v4926_v5  ;;  %v2619_v32 = vpack.c.bf16 %v2604_v20, %v2604_v20 }
 0xd5b   : > { %v2617_v36 = vpack.c.bf16 %v2600_v58, %v2600_v58  ;;  %v2592_v40 = vperm.slane %v2584_v47, %v4926_v5 }
 0xd5c   : > { %v2612_v30 = vsel %vm709_vm5, 0.0, %v2611_v22  ;;  %v2610_v31 = vsel %vm709_vm5, 0.0, %v2609_v23  ;;  %v2605_v35 = vrot.slane %v2588_v26, 4  ;;  %v2613_v45 = vpack.c.bf16 %v2588_v26, %v2588_v26 }
 0xd5d   : > { %v2620_v33 = vpack.c.bf16 %v2612_v30, %v2612_v30  ;;  %v2618_v34 = vpack.c.bf16 %v2610_v31, %v2610_v31  ;;  %v2607_v50 = vrot.slane %v2592_v40, 4  ;;  %v2615_v42 = vpack.c.bf16 %v2592_v40, %v2592_v40 }
 0xd5e   : > { %v2606_v38 = vsel %vm709_vm5, 0.0, %v2605_v35 }
 0xd5f   : > { %4603 = vxpose.binary.xlu0.c.b16.start.end [1/2] (short) (narrow) %v2620_v33, %v2619_v32, 16  ;;  %v2614_v46 = vpack.c.bf16 %v2606_v38, %v2606_v38  ;;  %v2608_v52 = vsel %vm709_vm5, 0.0, %v2607_v50 }
 0xd60   : > { %4606 = vxpose.binary.xlu2.c.b16.start.end [1/2] (short) (narrow) %v2618_v34, %v2617_v36, 16  ;;  %v2616_v51 = vpack.c.bf16 %v2608_v52, %v2608_v52 }
 0xd61   : > { %4609 = vxpose.binary.xlu1.c.b16.start.end [1/2] (short) (narrow) %v2614_v46, %v2613_v45, 16 }
 0xd6f   : > { %4615 = vxpose.binary.xlu0.c.b16.start.end [1/2] (short) (narrow) %v2694_v55, %v2693_v53, 16 }
 0xd70   : > { %4612 = vxpose.binary.xlu2.c.b16.start.end [1/2] (short) (narrow) %v2616_v51, %v2615_v42, 16 }
 0xe01   : > { %v4607_v57 = vpop.trf.xlu2 }
 0xe02   : > { %v2877_v0 = vrot.slane %v4607_v57, 4 }
 0xe09   : > { %v4608_v61 = vpop.trf.xlu2 }
 0xe0a   : > { %v2905_v10 = vrot.slane %v4608_v61, 4 }
 0xe0b   : > { %v4604_v63 = vpop.trf.xlu0 }
 0xe0c   : > { %v2883_v2 = vrot.slane %v4604_v63, 4 }
 0xe0d   : > { %v4610_v1 = vpop.trf.xlu1 }
 0xe0e   : > { %v2878_v4 = vsel %vm709_vm5, %v2877_v0, %v4610_v1  ;;  %v2483_v0 = vrot.slane %v5239_v25, 4 }
 0xe0f   : > { %v2882_v6 = vperm.slane %v2878_v4, %v4917_v54 }
 0xe10   : > { %v2484_v4 = vsel %vm709_vm5, %v5253_v28, %v2483_v0 }
 0xe11   : > { %v4613_v43 = vpop.trf.xlu2  ;;  %v2891_v12 = vrot.slane %v2882_v6, 4 }
 0xe12   : > { %v2884_v7 = vsel %vm709_vm5, %v2883_v2, %v4613_v43  ;;  %v2481_v2 = vrot.slane %v5253_v28, 4  ;;  %v2495_v43 = vrot.slane %v5247_v27, 4 }
 0xe13   : > { %v2888_v8 = vperm.slane %v2884_v7, %v4917_v54  ;;  %v4605_v9 = vpop.trf.xlu0 }
 0xe14   : > { %v2911_v14 = vrot.slane %v4605_v9, 4  ;;  %v2482_v7 = vsel %vm709_vm5, %v2481_v2, %v5239_v25  ;;  %v2496_v9 = vsel %vm709_vm5, %v5255_v29, %v2495_v43 }
 0xe15   : > { %v2889_v56 = vrot.slane %v2888_v8, 4  ;;  %v4611_v13 = vpop.trf.xlu1  ;;  %v2892_v18 = vsel %vm709_vm5, %v2888_v8, %v2891_v12  ;;  %v2493_v8 = vrot.slane %v5255_v29, 4 }
 0xe16   : > { %v2906_v16 = vsel %vm709_vm5, %v2905_v10, %v4611_v13  ;;  %v2900_v22 = vperm.slane %v2892_v18, %v4926_v5  ;;  %v2488_v10 = vperm.slane %v2482_v7, %v4917_v54  ;;  %v2504_v13 = vperm.slane %v2496_v9, %v4917_v54 }
 0xe17   : > { %v2890_v15 = vsel %vm709_vm5, %v2889_v56, %v2882_v6  ;;  %v2910_v17 = vperm.slane %v2906_v16, %v4917_v54  ;;  %v2492_v6 = vperm.slane %v2484_v4, %v4917_v54  ;;  %v2494_v28 = vsel %vm709_vm5, %v2493_v8, %v5247_v27 }
 0xe18   : > { %v2896_v37 = vperm.slane %v2890_v15, %v4926_v5  ;;  %v2953_v31 = vshrl.u32 %v2900_v22, 16  ;;  %v2903_v53 = vrot.slane %v2900_v22, 4  ;;  %v2500_v25 = vperm.slane %v2494_v28, %v4917_v54 }
 0xe19   : > { %v4614_v19 = vpop.trf.xlu2  ;;  %v2919_v20 = vrot.slane %v2910_v17, 4  ;;  %v2519_v12 = vrot.slane %v2492_v6, 4  ;;  %v2517_v16 = vrot.slane %v2504_v13, 4 }
 0xe1a   : > { %v2912_v58 = vsel %vm709_vm5, %v2911_v14, %v4614_v19  ;;  %v2901_v26 = vrot.slane %v2896_v37, 4  ;;  %v2937_v34 = vshrl.u32 %v2896_v37, 16  ;;  %v2904_v42 = vsel %vm709_vm5, 0, %v2903_v53 }
 0xe1b   : > { %v2916_v21 = vperm.slane %v2912_v58, %v4917_v54  ;;  %v2961_v57 = vshrl.u32 %v2904_v42, 16  ;;  %v5322_v1 = vpop.trf.xlu0  ;;  %v2507_v14 = vrot.slane %v2488_v10, 4  ;;  %v2520_v15 = vsel %vm709_vm5, %v2504_v13, %v2519_v12 }
 0xe1c   : > { %v2902_v35 = vsel %vm709_vm5, 0, %v2901_v26  ;;  %v2505_v18 = vrot.slane %v2500_v25, 4  ;;  %v2518_v19 = vsel %vm709_vm5, %v2517_v16, %v2492_v6 }
 0xe1d   : > { %v2917_v23 = vrot.slane %v2916_v21, 4  ;;  %v2920_v24 = vsel %vm709_vm5, %v2916_v21, %v2919_v20  ;;  %v2945_v40 = vshrl.u32 %v2902_v35, 16  ;;  %v2508_v29 = vsel %vm709_vm5, %v2500_v25, %v2507_v14 }
 0xe1e   : > { %v2928_v3 = vperm.slane %v2920_v24, %v4926_v5  ;;  %v2524_v21 = vperm.slane %v2518_v19, %v4926_v5  ;;  %v2506_v27 = vsel %vm709_vm5, %v2505_v18, %v2488_v10 }
 0xe1f   : > { %v2918_v30 = vsel %vm709_vm5, %v2917_v23, %v2910_v17  ;;  %v2528_v17 = vperm.slane %v2520_v15, %v4926_v5  ;;  %v2512_v24 = vperm.slane %v2506_v27, %v4926_v5 }
 0xe20   : > { %v2954_v32 = vshrl.u32 %v2928_v3, 16  ;;  %v2924_v33 = vperm.slane %v2918_v30, %v4926_v5  ;;  %v2951_v36 = vpack.i.b16 %v2928_v3, %v2900_v22  ;;  %v2931_v52 = vrot.slane %v2928_v3, 4 }
 0xe21   : > { %v2535_v20 = vrot.slane %v2528_v17, 4  ;;  %v2533_v26 = vrot.slane %v2524_v21, 4 }
 0xe22   : > { %v2955_v38 = vpack.i.b16 %v2954_v32, %v2953_v31  ;;  %v2938_v44 = vshrl.u32 %v2924_v33, 16  ;;  %v2929_v45 = vrot.slane %v2924_v33, 4  ;;  %v2935_v46 = vpack.i.b16 %v2924_v33, %v2896_v37 }
 0xe23   : > { %v2932_v55 = vsel %vm709_vm5, 0, %v2931_v52  ;;  %v5335_v56 = vpop.trf.xlu0  ;;  %v2516_v37 = vperm.slane %v2508_v29, %v4926_v5  ;;  %v2536_v23 = vsel %vm709_vm5, 0.0, %v2535_v20  ;;  %v2543_v31 = vpack.c.bf16 %v2528_v17, %v2528_v17 }
 0xe24   : > { %4621 = vxpose.binary.xlu2.c.b16.start.end [1/2] (short) (narrow) %v2955_v38, %v2951_v36, 16  ;;  %v2939_v47 = vpack.i.b16 %v2938_v44, %v2937_v34  ;;  %v2930_v48 = vsel %vm709_vm5, 0, %v2929_v45  ;;  %v2962_v51 = vshrl.u32 %v2932_v55, 16  ;;  %v2959_v61 = vpack.i.b16 %v2932_v55, %v2904_v42 }
 0xe25   : > { %v2946_v49 = vshrl.u32 %v2930_v48, 16  ;;  %v2943_v50 = vpack.i.b16 %v2930_v48, %v2902_v35  ;;  %v2531_v22 = vrot.slane %v2516_v37, 4  ;;  %v2544_v3 = vpack.c.bf16 %v2536_v23, %v2536_v23 }
 0xe26   : > { %4618 = vxpose.binary.xlu0.c.b16.start.end [1/2] (short) (narrow) %v2939_v47, %v2935_v46, 16  ;;  %v2963_v63 = vpack.i.b16 %v2962_v51, %v2961_v57  ;;  %v2529_v33 = vrot.slane %v2512_v24, 4  ;;  %v2534_v34 = vsel %vm709_vm5, 0.0, %v2533_v26  ;;  %v2539_v44 = vpack.c.bf16 %v2516_v37, %v2516_v37 }
 0xe27   : > { %v2947_v41 = vpack.i.b16 %v2946_v49, %v2945_v40  ;;  %v2532_v30 = vsel %vm709_vm5, 0.0, %v2531_v22  ;;  %v2723_v38 = vrot.slane %v2544_v3, 4  ;;  %v2703_v45 = vrot.slane %v2543_v31, 4 }
 0xe28   : > { %v2540_v36 = vpack.c.bf16 %v2532_v30, %v2532_v30  ;;  %v2542_v46 = vpack.c.bf16 %v2534_v34, %v2534_v34  ;;  %v2530_v47 = vsel %vm709_vm5, 0.0, %v2529_v33  ;;  %v2541_v48 = vpack.c.bf16 %v2524_v21, %v2524_v21 }
 0xe29   : > { %4624 = vxpose.binary.xlu1.c.b16.start.end [1/2] (short) (narrow) %v2947_v41, %v2943_v50, 16  ;;  %v2704_v41 = vsel %vm709_vm5, %v2703_v45, %v2539_v44  ;;  %v2538_v53 = vpack.c.bf16 %v2530_v47, %v2530_v47  ;;  %v2537_v51 = vpack.c.bf16 %v2512_v24, %v2512_v24 }
 0xe2a   : > { %v2724_v49 = vsel %vm709_vm5, %v2723_v38, %v2540_v36  ;;  %v2717_v55 = vrot.slane %v2542_v46, 4  ;;  %v2697_v57 = vrot.slane %v2541_v48, 4 }
 0xe2c   : > { %v2718_v43 = vsel %vm709_vm5, %v2717_v55, %v2538_v53  ;;  %v2698_v7 = vsel %vm709_vm5, %v2697_v57, %v2537_v51 }
 0xe2d   : > { %v2722_v25 = vperm.slane %v2718_v43, %v4917_v54  ;;  %v2702_v17 = vperm.slane %v2698_v7, %v4917_v54 }
 0xe36   : > { %4627 = vxpose.binary.xlu0.c.b16.start.end [1/2] (short) (narrow) %v2963_v63, %v2959_v61, 16  ;;  %v2728_v61 = vperm.slane %v2724_v49, %v4917_v54  ;;  %v2708_v63 = vperm.slane %v2704_v41, %v4917_v54 }
 0xe38   : > { %v2729_v10 = vrot.slane %v2728_v61, 4  ;;  %v2709_v12 = vrot.slane %v2708_v63, 4 }
 0xe3a   : > { %v2730_v29 = vsel %vm709_vm5, %v2729_v10, %v2722_v25  ;;  %v2710_v20 = vsel %vm709_vm5, %v2709_v12, %v2702_v17 }
 0xe3b   : > { %v2734_v21 = vperm.slane %v2730_v29, %v4926_v5  ;;  %v2714_v23 = vperm.slane %v2710_v20, %v4926_v5 }
 0xe3d   : > { %v2735_v30 = vrot.slane %v2734_v21, 4  ;;  %v2741_v38 = vshrl.u32 %v2734_v21, 16  ;;  %v2739_v41 = vpack.i.b16 %v2734_v21, %v2714_v23  ;;  %v2680_v21 = vperm.slane %v5270_v39, %v4926_v5 }
 0xe3f   : > { %v2736_v47 = vsel %vm709_vm5, 0, %v2735_v30 }
 0xe40   : > { %v2747_v51 = vshrl.u32 %v2736_v47, 16 }
 0xec5   : > { %v4622_v35 = vpop.trf.xlu2 }
 0xec6   : > { %v3093_v50 = vrot.slane %v4622_v35, 4 }
 0xecd   : > { %v4623_v4 = vpop.trf.xlu2 }
 0xece   : > { %v3113_v13 = vrot.slane %v4623_v4, 4 }
 0xed2   : > { %v4619_v58 = vpop.trf.xlu0 }
 0xed3   : > { %v3094_v0 = vsel %vm709_vm5, %v3093_v50, %v4619_v58 }
 0xed4   : > { %v3098_v8 = vperm.slane %v3094_v0, %v4917_v54 }
 0xed5   : > { %v4625_v40 = vpop.trf.xlu1 }
 0xeda   : > { %v4620_v32 = vpop.trf.xlu0 }
 0xedb   : > { %v3114_v18 = vsel %vm709_vm5, %v3113_v13, %v4620_v32  ;;  %v2715_v32 = vrot.slane %v2714_v23, 4 }
 0xedc   : > { %v3118_v27 = vperm.slane %v3114_v18, %v4917_v54 }
 0xedd   : > { %v4626_v15 = vpop.trf.xlu1  ;;  %v2716_v53 = vsel %vm709_vm5, 0, %v2715_v32 }
 0xede   : > { %v2745_v63 = vpack.i.b16 %v2736_v47, %v2716_v53  ;;  %v2746_v0 = vshrl.u32 %v2716_v53, 16 }
 0xee2   : > { %v4628_v52 = vpop.trf.xlu0 }
 0xee3   : > { %v3099_v42 = vrot.slane %v4628_v52, 4  ;;  %v2740_v52 = vshrl.u32 %v2714_v23, 16  ;;  %v2668_v23 = vperm.slane %v5273_v59, %v4926_v5 }
 0xee5   : > { %v3100_v2 = vsel %vm709_vm5, %v3099_v42, %v4625_v40  ;;  %v2742_v57 = vpack.i.b16 %v2741_v38, %v2740_v52 }
 0xee6   : > { %v3104_v6 = vperm.slane %v3100_v2, %v4917_v54  ;;  %v2748_v2 = vpack.i.b16 %v2747_v51, %v2746_v0 }
 0xee8   : > { %v3105_v9 = vrot.slane %v3104_v6, 4 }
 0xeea   : > { %v3106_v28 = vsel %vm709_vm5, %v3105_v9, %v3098_v8  ;;  %v4629_v14 = vpop.trf.xlu0  ;;  %v4728_v9 = vld [vmem:[%s5049_s1] sm:$0xff] }
 0xeeb   : > { %v3119_v16 = vrot.slane %v4629_v14, 4  ;;  %v3110_v19 = vperm.slane %v3106_v28, %v4926_v5 }
 0xeed   : > { %v3120_v37 = vsel %vm709_vm5, %v3119_v16, %v4626_v15  ;;  %v3111_v24 = vrot.slane %v3110_v19, 4  ;;  %v3136_v31 = vshrl.u32 %v3110_v19, 16 }
 0xeee   : > { %v3124_v58 = vperm.slane %v3120_v37, %v4917_v54 }
 0xeef   : > { %v3112_v35 = vsel %vm709_vm5, 0, %v3111_v24  ;;  %v2695_v24 = vpack.c.bf16 %v2680_v21, %v2680_v21 }
 0xef0   : > { %v3125_v22 = vrot.slane %v3124_v58, 4  ;;  %v3142_v40 = vshrl.u32 %v3112_v35, 16 }
 0xef2   : > { %v3126_v26 = vsel %vm709_vm5, %v3125_v22, %v3118_v27  ;;  %v2687_v27 = vrot.slane %v2680_v21, 4 }
 0xef3   : > { %v3130_v3 = vperm.slane %v3126_v26, %v4926_v5 }
 0xef4   : > { %v2688_v22 = vsel %vm709_vm5, 0.0, %v2687_v27 }
 0xef5   : > { %v3135_v33 = vpack.i.b16 %v3130_v3, %v3110_v19  ;;  %v3137_v34 = vshrl.u32 %v3130_v3, 16  ;;  %v3131_v36 = vrot.slane %v3130_v3, 4  ;;  %v2696_v26 = vpack.c.bf16 %v2688_v22, %v2688_v22 }
 0xef6   : > { %v2683_v3 = vrot.slane %v2668_v23, 4 }
 0xef7   : > { %v3149_v44 = vsel %vm1378_vm6, %v3135_v33, 0  ;;  %v3138_v45 = vpack.i.b16 %v3137_v34, %v3136_v31  ;;  %v3132_v46 = vsel %vm709_vm5, 0, %v3131_v36  ;;  %v2691_v31 = vpack.c.bf16 %v2668_v23, %v2668_v23 }
 0xef8   : > { %3158 = vmatpush.bf16.msrb.mxu2 %v3149_v44  ;;  %v3141_v48 = vpack.i.b16 %v3132_v46, %v3112_v35  ;;  %v3143_v49 = vshrl.u32 %v3132_v46, 16  ;;  %v2684_v30 = vsel %vm709_vm5, 0.0, %v2683_v3  ;;  %v2664_v33 = vperm.slane %v5276_v60, %v4926_v5 }
 0xef9   : > { %v3168_v50 = vsel %vm1378_vm6, %v3138_v45, 0  ;;  %v2692_v32 = vpack.c.bf16 %v2684_v30, %v2684_v30 }
 0xefa   : > { %3177 = vmatpush.bf16.msrb.mxu3 %v3168_v50  ;;  %v3187_v55 = vsel %vm1378_vm6, %v3141_v48, 0  ;;  %v3144_v42 = vpack.i.b16 %v3143_v49, %v3142_v40  ;;  %v2681_v34 = vrot.slane %v2664_v33, 4  ;;  %v2689_v35 = vpack.c.bf16 %v2664_v33, %v2664_v33 }
 0xefb   : > { %4383 = vmatmul.msk.bf16.vlgmr.msrb.gmra.mxu2 %vm1374_vm7, %v2739_v41  ;;  %3196 = vmatpush.bf16.msrb.mxu0 %v3187_v55 }
 0xefc   : > { %v3206_v61 = vsel %vm1378_vm6, %v3144_v42, 0  ;;  %v2682_v39 = vsel %vm709_vm5, 0.0, %v2681_v34 }
 0xefd   : > { %4384 = vmatmul.msk.bf16.vlgmr.msrb.gmra.mxu3 %vm1374_vm7, %v2742_v57  ;;  %3215 = vmatpush.bf16.msra.mxu1 %v3206_v61  ;;  %v2690_v36 = vpack.c.bf16 %v2682_v39, %v2682_v39 }
 0xefe   : > { %4385 = vmatmul.msk.bf16.vlgmr.msrb.gmra.mxu0 %vm1374_vm7, %v2745_v63 }
 0xf00   : > { %4386 = vmatmul.msk.bf16.vlgmr.msra.gmra.mxu1 %vm1374_vm7, %v2748_v2 }
 0xf7b   : > { %v3198_v4 = vpop.f32.mrf.mxu0 }
 0xf7c   : > { %v3223_v6 = vmul.f32 0.35355338, %v3198_v4 }
 0xf7d   : > { %v3217_v43 = vpop.f32.mrf.mxu1 }
 0xf7e   : > { %v3224_v7 = vmul.f32 0.35355338, %v3217_v43  ;;  %v3160_v8 = vpop.f32.mrf.mxu2  ;;  %v3227_v10 = vadd.f32 %v4728_v9, %v3223_v6  ;;  %v3405_v43 = vrot.slane %v5322_v1, 4  ;;  %v3433_v1 = vrot.slane %v5335_v56, 4 }
 0xf7f   : > { %v3221_v15 = vmul.f32 0.35355338, %v3160_v8 }
 0xf80   : > { %v3179_v12 = vpop.f32.mrf.mxu3  ;;  %v3235_v13 = vsel %vm1374_vm7, %v3227_v10, -inf  ;;  %v3228_v28 = vadd.f32 %v4728_v9, %v3224_v7 }
 0xf81   : > { %v3222_v14 = vmul.f32 0.35355338, %v3179_v12  ;;  %3236 = vmax.xlane.f32.xlu2 %v3235_v13  ;;  %v5393_v37 = vadd.f32 %v4728_v9, %v3221_v15 }
 0xf82   : > { %v3238_v25 = vsel %vm1374_vm7, %v3228_v28, -inf }
 0xf83   : > { %3239 = vmax.xlane.f32.xlu0 %v3238_v25  ;;  %v3200_v16 = vpop.f32.mrf.mxu0  ;;  %v3226_v17 = vadd.f32 %v4728_v9, %v3222_v14  ;;  %v3229_v58 = vsel %vm1374_vm7, %v5393_v37, -inf }
 0xf85   : > { %v3219_v29 = vpop.f32.mrf.mxu1  ;;  %v3232_v18 = vsel %vm1374_vm7, %v3226_v17, -inf }
 0xf86   : > { %3233 = vmax.xlane.f32.xlu1 %v3232_v18  ;;  %v3162_v19 = vpop.f32.mrf.mxu2 }
 0xf88   : > { %v3181_v20 = vpop.f32.mrf.mxu3 }
 0xf8b   : > { %3230 = vmax.xlane.f32.xlu0 %v3229_v58 }
 0xfaa   : > { %4633 = vxpose.binary.xlu2.c.b16.start.end [1/2] (short) (narrow) %v2696_v26, %v2695_v24, 16 }
 0xfb4   : > { %4636 = vxpose.binary.xlu0.c.b16.start.end [1/2] (short) (narrow) %v2692_v32, %v2691_v31, 16 }
 0xfc0   : > { %4630 = vxpose.binary.xlu1.c.b16.start.end [1/2] (short) (narrow) %v2690_v36, %v2689_v35, 16 }
 0xff4   : > { %v3237_v44 = vpop.xlane.xlu2 %3236 }
 0xff5   : > { %v3243_v46 = vsub.f32 %v3227_v10, %v3237_v44 }
 0xff6   : > { %v3240_v48 = vpop.xlane.xlu0 %3239 }
 0xff7   : > { %v3249_v47 = vmul.f32 1.442695, %v3243_v46  ;;  %v3244_v40 = vsub.f32 %v3228_v28, %v3240_v48 }
 0xff9   : > { %v3234_v38 = vpop.xlane.xlu1 %3233  ;;  %v3251_v60 = vmul.f32 1.442695, %v3244_v40 }
 0xffa   : > { %v3242_v59 = vsub.f32 %v3226_v17, %v3234_v38 }
 0xffc   : > { %v3247_v45 = vmul.f32 1.442695, %v3242_v59 }
 0xffe   : > { %4708 = vpow2.f32 %v3247_v45  ;;  %v5418_v42 = vpop.xlane.xlu0 %3230 }
 0xfff   : > { %4710 = vpow2.f32 %v3249_v47 }
0x1000   : > { %4712 = vpow2.f32 %v3251_v60 }
0x1004   : > { %v5406_v49 = vpop.eup %4708 }
0x1005   : > { %v3256_v50 = vsel %vm1374_vm7, %v5406_v49, 0.0  ;;  %v5410_v41 = vpop.eup %4710 }
0x1006   : > { %v3259_v52 = vsel %vm1374_vm7, %v5410_v41, 0.0  ;;  %v5414_v53 = vpop.eup %4712 }
0x1007   : > { %v3262_v55 = vsel %vm1374_vm7, %v5414_v53, 0.0 }
0x101b   : > { %3257 = vadd.xlane.f32.xlu2 %v3256_v50 }
0x1020   : > { %3260 = vadd.xlane.f32.xlu1 %v3259_v52 }
0x1028   : > { %3263 = vadd.xlane.f32.xlu1 %v3262_v55 }
0x104b   : > { %v4634_v51 = vpop.trf.xlu2 }
0x104c   : > { %v3411_v61 = vrot.slane %v4634_v51, 4 }
0x1053   : > { %v4635_v0 = vpop.trf.xlu2 }
0x1054   : > { %v3439_v4 = vrot.slane %v4635_v0, 4 }
0x1060   : > { %v4637_v57 = vpop.trf.xlu0 }
0x1061   : > { %v3412_v63 = vsel %vm709_vm5, %v3411_v61, %v4637_v57 }
0x1062   : > { %v3416_v2 = vperm.slane %v3412_v63, %v4917_v54 }
0x1064   : > { %v3417_v7 = vrot.slane %v3416_v2, 4 }
0x1068   : > { %v4638_v6 = vpop.trf.xlu0 }
0x1069   : > { %v3440_v10 = vsel %vm709_vm5, %v3439_v4, %v4638_v6 }
0x106a   : > { %v3444_v14 = vperm.slane %v3440_v10, %v4917_v54 }
0x106c   : > { %v4631_v8 = vpop.trf.xlu1  ;;  %v3445_v16 = vrot.slane %v3444_v14, 4 }
0x106d   : > { %v3406_v9 = vsel %vm709_vm5, %v3405_v43, %v4631_v8 }
0x106e   : > { %v3410_v12 = vperm.slane %v3406_v9, %v4917_v54 }
0x1070   : > { %v3418_v13 = vsel %vm709_vm5, %v3417_v7, %v3410_v12  ;;  %v3419_v28 = vrot.slane %v3410_v12, 4 }
0x1071   : > { %v5430_v25 = vperm.slane %v3418_v13, %v4926_v5 }
0x1072   : > { %v3420_v15 = vsel %vm709_vm5, %v3416_v2, %v3419_v28 }
0x1073   : > { %v3428_v29 = vperm.slane %v3420_v15, %v4926_v5  ;;  %v3429_v20 = vrot.slane %v5430_v25, 4  ;;  %v3465_v32 = vshrl.u32 %v5430_v25, 16 }
0x1074   : > { %v4632_v17 = vpop.trf.xlu1 }
0x1075   : > { %v3434_v18 = vsel %vm709_vm5, %v3433_v1, %v4632_v17  ;;  %v3431_v22 = vrot.slane %v3428_v29, 4  ;;  %v3430_v56 = vsel %vm709_vm5, 0, %v3429_v20  ;;  %v3481_v31 = vshrl.u32 %v3428_v29, 16 }
0x1076   : > { %v3438_v19 = vperm.slane %v3434_v18, %v4917_v54  ;;  %v3473_v36 = vshrl.u32 %v3430_v56, 16 }
0x1077   : > { %v3432_v39 = vsel %vm709_vm5, 0, %v3431_v22 }
0x1078   : > { %v3446_v58 = vsel %vm709_vm5, %v3445_v16, %v3438_v19  ;;  %v3447_v21 = vrot.slane %v3438_v19, 4  ;;  %v3489_v40 = vshrl.u32 %v3432_v39, 16 }
0x1079   : > { %v3452_v27 = vperm.slane %v3446_v58, %v4926_v5 }
0x107a   : > { %v3448_v23 = vsel %vm709_vm5, %v3444_v14, %v3447_v21 }
0x107b   : > { %v3456_v24 = vperm.slane %v3448_v23, %v4926_v5  ;;  %v3457_v26 = vrot.slane %v3452_v27, 4  ;;  %v3463_v3 = vpack.i.b16 %v3452_v27, %v5430_v25  ;;  %v3466_v30 = vshrl.u32 %v3452_v27, 16 }
0x107d   : > { %v3482_v33 = vshrl.u32 %v3456_v24, 16  ;;  %v3458_v34 = vsel %vm709_vm5, 0, %v3457_v26  ;;  %v3459_v35 = vrot.slane %v3456_v24, 4  ;;  %v3467_v59 = vpack.i.b16 %v3466_v30, %v3465_v32 }
0x107e   : > { %v3474_v38 = vshrl.u32 %v3458_v34, 16  ;;  %v3479_v44 = vpack.i.b16 %v3456_v24, %v3428_v29  ;;  %v3471_v47 = vpack.i.b16 %v3458_v34, %v3430_v56 }
0x107f   : > { %v3483_v45 = vpack.i.b16 %v3482_v33, %v3481_v31  ;;  %v3460_v46 = vsel %vm709_vm5, 0, %v3459_v35 }
0x1080   : > { %v3475_v48 = vpack.i.b16 %v3474_v38, %v3473_v36  ;;  %v3490_v60 = vshrl.u32 %v3460_v46, 16  ;;  %v3487_v50 = vpack.i.b16 %v3460_v46, %v3432_v39 }
0x1081   : > { %4645 = vxpose.binary.xlu2.c.b16.start.end [1/2] (short) (narrow) %v3483_v45, %v3479_v44, 16 }
0x1082   : > { %4642 = vxpose.binary.xlu0.c.b16.start.end [1/2] (short) (narrow) %v3475_v48, %v3471_v47, 16  ;;  %v3491_v52 = vpack.i.b16 %v3490_v60, %v3489_v40 }
0x1084   : > { %4639 = vxpose.binary.xlu1.c.b16.start.end [1/2] (short) (narrow) %v3491_v52, %v3487_v50, 16 }
0x108e   : > { %v3258_v55 = vpop.xlane.xlu2 %3257 }
0x108f   : > { %4714 = vrcp.f32 %v3258_v55 }
0x1093   : > { %v3261_v51 = vpop.xlane.xlu1 %3260 }
0x1094   : > { %4716 = vrcp.f32 %v3261_v51 }
0x1095   : > { %v4715_v57 = vpop.eup %4714 }
0x1096   : > { %v3270_v61 = vmul.f32 %v4715_v57, %v5406_v49  ;;  %v3241_v49 = vsub.f32 %v5393_v37, %v5418_v42 }
0x1098   : > { %v3274_v63 = vpack.c.bf16 %v3270_v61, %v3270_v61  ;;  %v3245_v13 = vmul.f32 1.442695, %v3241_v49 }
0x109a   : > { %v4717_v0 = vpop.eup %4716  ;;  %v3696_v2 = vsel %vm1374_vm7, %v3274_v63, 0 }
0x109b   : > { %v3264_v4 = vpop.xlane.xlu1 %3263  ;;  %3705 = vmatpush.bf16.xpose.msra.mxu3 %v3696_v2  ;;  %v3271_v6 = vmul.f32 %v4717_v0, %v5410_v41 }
0x109c   : > { %4718 = vrcp.f32 %v3264_v4 }
0x109d   : > { %v3275_v43 = vpack.c.bf16 %v3271_v6, %v3271_v6  ;;  %4720 = vpow2.f32 %v3245_v13 }
0x109f   : > { %v3715_v7 = vsel %vm1374_vm7, %v3275_v43, 0 }
0x10a0   : > { %3724 = vmatpush.bf16.xpose.msra.mxu0 %v3715_v7 }
0x10a2   : > { %v4719_v8 = vpop.eup %4718 }
0x10a3   : > { %v3272_v9 = vmul.f32 %v4719_v8, %v5414_v53  ;;  %v4721_v28 = vpop.eup %4720 }
0x10a4   : > { %v3253_v41 = vsel %vm1374_vm7, %v4721_v28, 0.0 }
0x10a5   : > { %v3276_v10 = vpack.c.bf16 %v3272_v9, %v3272_v9 }
0x10a7   : > { %v3734_v12 = vsel %vm1374_vm7, %v3276_v10, 0 }
0x10a8   : > { %3743 = vmatpush.bf16.xpose.msrb.mxu1 %v3734_v12 }
0x10f3   : > { %3254 = vadd.xlane.f32.xlu0 %v3253_v41 }
0x111c   : > { %4648 = vxpose.binary.xlu0.c.b16.start.end [1/2] (short) (narrow) %v3467_v59, %v3463_v3, 16 }
0x1122   : > { %v4646_v37 = vpop.trf.xlu2 }
0x1123   : > { %v3621_v20 = vrot.slane %v4646_v37, 4 }
0x112a   : > { %v4647_v24 = vpop.trf.xlu2 }
0x112b   : > { %v3641_v30 = vrot.slane %v4647_v24, 4 }
0x112e   : > { %v4643_v14 = vpop.trf.xlu0 }
0x1130   : > { %v4640_v29 = vpop.trf.xlu1 }
0x1131   : > { %v3627_v18 = vrot.slane %v4640_v29, 4 }
0x1133   : > { %v3628_v42 = vsel %vm709_vm5, %v3627_v18, %v4643_v14 }
0x1134   : > { %v3632_v58 = vperm.slane %v3628_v42, %v4917_v54 }
0x1136   : > { %v4644_v15 = vpop.trf.xlu0  ;;  %v3633_v23 = vrot.slane %v3632_v58, 4 }
0x1138   : > { %v4641_v19 = vpop.trf.xlu1 }
0x1139   : > { %v3647_v21 = vrot.slane %v4641_v19, 4 }
0x113b   : > { %v3648_v26 = vsel %vm709_vm5, %v3647_v21, %v4644_v15 }
0x113c   : > { %v3652_v31 = vperm.slane %v3648_v26, %v4917_v54 }
0x113e   : > { %v3653_v39 = vrot.slane %v3652_v31, 4 }
0x1166   : > { %v3255_v25 = vpop.xlane.xlu0 %3254 }
0x1167   : > { %4722 = vrcp.f32 %v3255_v25 }
0x116d   : > { %v4723_v1 = vpop.eup %4722 }
0x116e   : > { %v3269_v53 = vmul.f32 %v4723_v1, %v4721_v28 }
0x1170   : > { %v3273_v16 = vpack.c.bf16 %v3269_v53, %v3269_v53 }
0x1172   : > { %v3677_v17 = vsel %vm1374_vm7, %v3273_v16, 0 }
0x1173   : > { %3686 = vmatpush.bf16.xpose.msra.mxu2 %v3677_v17 }
0x11c8   : > { %v4649_v27 = vpop.trf.xlu0 }
0x11c9   : > { %v3622_v22 = vsel %vm709_vm5, %v3621_v20, %v4649_v27 }
0x11ca   : > { %v3626_v56 = vperm.slane %v3622_v22, %v4917_v54 }
0x11cc   : > { %v3634_v3 = vsel %vm709_vm5, %v3633_v23, %v3626_v56 }
0x11cd   : > { %v3638_v32 = vperm.slane %v3634_v3, %v4926_v5 }
0x11cf   : > { %v3639_v36 = vrot.slane %v3638_v32, 4  ;;  %v3664_v44 = vshrl.u32 %v3638_v32, 16 }
0x11d0   : > { %v4650_v33 = vpop.trf.xlu0 }
0x11d1   : > { %v3642_v34 = vsel %vm709_vm5, %v3641_v30, %v4650_v33  ;;  %v3640_v48 = vsel %vm709_vm5, 0, %v3639_v36 }
0x11d2   : > { %v3646_v35 = vperm.slane %v3642_v34, %v4917_v54  ;;  %v3670_v52 = vshrl.u32 %v3640_v48, 16 }
0x11d4   : > { %v3654_v38 = vsel %vm709_vm5, %v3653_v39, %v3646_v35 }
0x11d5   : > { %v3658_v59 = vperm.slane %v3654_v38, %v4926_v5 }
0x11d7   : > { %v3659_v45 = vrot.slane %v3658_v59, 4  ;;  %v3665_v46 = vshrl.u32 %v3658_v59, 16  ;;  %v3663_v47 = vpack.i.b16 %v3658_v59, %v3638_v32 }
0x11d9   : > { %4387 = vmatmul.msk.bf16.vlgmr.msra.gmra.mxu2 %vm1374_vm7, %v3663_v47  ;;  %v3666_v40 = vpack.i.b16 %v3665_v46, %v3664_v44  ;;  %v3660_v60 = vsel %vm709_vm5, 0, %v3659_v45 }
0x11da   : > { %v3669_v50 = vpack.i.b16 %v3660_v60, %v3640_v48  ;;  %v3671_v55 = vshrl.u32 %v3660_v60, 16 }
0x11db   : > { %4388 = vmatmul.msk.bf16.vlgmr.msra.gmra.mxu3 %vm1374_vm7, %v3666_v40 }
0x11dc   : > { %4389 = vmatmul.msk.bf16.vlgmr.msra.gmra.mxu0 %vm1374_vm7, %v3669_v50  ;;  %v3672_v51 = vpack.i.b16 %v3671_v55, %v3670_v52 }
0x11de   : > { %4390 = vmatmul.msk.bf16.vlgmr.msrb.gmra.mxu1 %vm1374_vm7, %v3672_v51 }
0x1259   : > { %v3726_v57 = vpop.f32.mrf.mxu0 }
0x125b   : > { %v3745_v61 = vpop.f32.mrf.mxu1 }
0x125c   : > { %v3688_v63 = vpop.f32.mrf.mxu2 }
0x125d   : > { %v4651_v0 = vpack.i.bf16 %v3688_v63, %v3726_v57 }
0x125e   : > { %v3707_v2 = vpop.f32.mrf.mxu3 }
0x125f   : > { %v4658_v4 = vpack.i.bf16 %v3707_v2, %v3745_v61  ;;  %4652 = vxpose.xlu2.b32.start.end [1/1] (short) (narrow) %v4651_v0, 8 }
0x1261   : > { %4659 = vxpose.xlu0.b32.start.end [1/1] (short) (narrow) %v4658_v4, 8  ;;  %v3728_v6 = vpop.f32.mrf.mxu0 }
0x1263   : > { %v3747_v43 = vpop.f32.mrf.mxu1 }
0x1264   : > { %v3690_v7 = vpop.f32.mrf.mxu2 }
0x1266   : > { %v3709_v8 = vpop.f32.mrf.mxu3 }
0x12f8   : > { %v4653_v9 = vpop.trf.xlu2 }
0x12f9   : > { %v4657_v10 = vunpack.i.h.bf16 %v4653_v9  ;;  %v4654_v12 = vunpack.i.l.bf16 %v4653_v9 }
0x12fb   : > { %v3879_v49 = vrot.slane %v4657_v10, 4  ;;  %v3877_v13 = vrot.slane %v4654_v12, 4 }
0x12fd   : > { %v3878_v28 = vsel %vm709_vm5, %v3877_v13, %v4657_v10  ;;  %v3880_v41 = vsel %vm709_vm5, %v4654_v12, %v3879_v49 }
0x12fe   : > { %v3884_v1 = vperm.slane %v3878_v28, %v4917_v54  ;;  %v3888_v53 = vperm.slane %v3880_v41, %v4917_v54 }
0x1300   : > { %v3903_v37 = vrot.slane %v3884_v1, 4  ;;  %v3915_v42 = vrot.slane %v3888_v53, 4 }
0x1305   : > { %v4660_v14 = vpop.trf.xlu0 }
0x1306   : > { %v4664_v15 = vunpack.i.h.bf16 %v4660_v14  ;;  %v4661_v25 = vunpack.i.l.bf16 %v4660_v14  ;;  %v4470_v14 = vld [vmem:[%s5602_s7 + $0x10] sm:$0xff] }
0x1308   : > { %v3891_v16 = vrot.slane %v4664_v15, 4  ;;  %v3889_v17 = vrot.slane %v4661_v25, 4 }
0x130a   : > { %v3890_v29 = vsel %vm709_vm5, %v3889_v17, %v4664_v15  ;;  %v3892_v18 = vsel %vm709_vm5, %v4661_v25, %v3891_v16 }
0x130b   : > { %v3896_v19 = vperm.slane %v3890_v29, %v4917_v54  ;;  %v3900_v20 = vperm.slane %v3892_v18, %v4917_v54  ;;  %v4676_v18 = vld [vmem:[%s5603_s8 + $0x1] ss:$0 sm:$0xff] }
0x130d   : > { %v3901_v58 = vrot.slane %v3896_v19, 4  ;;  %v3904_v21 = vsel %vm709_vm5, %v3896_v19, %v3903_v37  ;;  %v3913_v27 = vrot.slane %v3900_v20, 4  ;;  %v3916_v22 = vsel %vm709_vm5, %v3900_v20, %v3915_v42 }
0x130e   : > { %v3912_v23 = vperm.slane %v3904_v21, %v4926_v5  ;;  %v3924_v56 = vperm.slane %v3916_v22, %v4926_v5 }
0x130f   : > { %v3902_v24 = vsel %vm709_vm5, %v3901_v58, %v3884_v1  ;;  %v3914_v26 = vsel %vm709_vm5, %v3913_v27, %v3888_v53 }
0x1310   : > { %v3908_v3 = vperm.slane %v3902_v24, %v4926_v5  ;;  %v3927_v30 = vrot.slane %v3912_v23, 4  ;;  %v3920_v31 = vperm.slane %v3914_v26, %v4926_v5  ;;  %v3931_v32 = vrot.slane %v3924_v56, 4  ;;  %v4473_v24 = vld [vmem:[%s5606_s11 + $0x18] sm:$0xff] }
0x1311   : > { %4108 = vmatpush.bf16.msrb.mxu3 %v4473_v24  ;;  %v4477_v26 = vld [vmem:[%s5608_s13 + $0x38] sm:$0xff] }
0x1312   : > { %v3925_v33 = vrot.slane %v3908_v3, 4  ;;  %v3928_v34 = vsel %vm709_vm5, 0.0, %v3927_v30  ;;  %v3929_v39 = vrot.slane %v3920_v31, 4  ;;  %v3932_v35 = vsel %vm709_vm5, 0.0, %v3931_v32  ;;  %4162 = vmatpush.bf16.msrb.mxu0 %v4477_v26 }
0x1313   : > { %v3938_v36 = vrot.slane %v3928_v34, 4  ;;  %v3933_v38 = vsel %vm709_vm5, %v3927_v30, %v3908_v3  ;;  %v3944_v59 = vsel %vm709_vm5, %v3931_v32, %v3920_v31  ;;  %v3949_v44 = vrot.slane %v3932_v35, 4  ;;  %v4476_v31 = vld [vmem:[%s5608_s13 + $0x30] sm:$0xff] }
0x1314   : > { %v3926_v45 = vsel %vm709_vm5, 0.0, %v3925_v33  ;;  %v3930_v46 = vsel %vm709_vm5, 0.0, %v3929_v39  ;;  %v3937_v47 = vperm.slane %v3933_v38, %v4917_v54  ;;  %v3948_v48 = vperm.slane %v3944_v59, %v4917_v54  ;;  %v4677_v59 = vld [vmem:[%s5604_s9 + $0x1] ss:$0 sm:$0xff] }
0x1315   : > { %v3939_v40 = vsel %vm709_vm5, %v3938_v36, %v3926_v45  ;;  %v3950_v60 = vsel %vm709_vm5, %v3949_v44, %v3930_v46  ;;  %v4678_v46 = vld [vmem:[%s5605_s10 + $0x1] ss:$0 sm:$0xff] }
0x1316   : > { %v3943_v50 = vperm.slane %v3939_v40, %v4917_v54  ;;  %v3954_v52 = vperm.slane %v3950_v60, %v4917_v54  ;;  %v3957_v55 = vrot.slane %v3937_v47, 4  ;;  %v3969_v51 = vrot.slane %v3948_v48, 4  ;;  %4163 = vmatpush.bf16.msrb.mxu0 %v4476_v31  ;;  %v4475_v60 = vld [vmem:[%s5608_s13 + $0x28] sm:$0xff] }
0x1318   : > { %v3955_v57 = vrot.slane %v3943_v50, 4  ;;  %v3967_v61 = vrot.slane %v3954_v52, 4  ;;  %v3958_v63 = vsel %vm709_vm5, %v3943_v50, %v3957_v55  ;;  %v3970_v0 = vsel %vm709_vm5, %v3954_v52, %v3969_v51  ;;  %v4474_v50 = vld [vmem:[%s5608_s13 + $0x20] sm:$0xff] }
0x1319   : > { %v3966_v2 = vperm.slane %v3958_v63, %v4926_v5  ;;  %v3978_v4 = vperm.slane %v3970_v0, %v4926_v5  ;;  %v4679_v52 = vld [vmem:[%s5607_s12 + $0x1] ss:$0 sm:$0xff] }
0x131a   : > { %v3956_v6 = vsel %vm709_vm5, %v3955_v57, %v3937_v47  ;;  %v3968_v43 = vsel %vm709_vm5, %v3967_v61, %v3948_v48  ;;  %4164 = vmatpush.bf16.msrb.mxu0 %v4475_v60  ;;  %v4680_v0 = vld [vmem:[%s5609_s14 + $0x1] ss:$0 sm:$0xff] }
0x131b   : > { %v3962_v7 = vperm.slane %v3956_v6, %v4926_v5  ;;  %v3974_v54 = vperm.slane %v3968_v43, %v4926_v5  ;;  %v3985_v8 = vrot.slane %v3966_v2, 4  ;;  %v3983_v9 = vrot.slane %v3978_v4, 4  ;;  %v4471_v5 = vld [vmem:[%s5602_s7 + $0x18] sm:$0xff] }
0x131c   : > { %4034 = vmatpush.bf16.msrb.mxu2 %v4471_v5 }
0x131d   : > { %v3979_v10 = vrot.slane %v3974_v54, 4  ;;  %v3981_v12 = vrot.slane %v3962_v7, 4  ;;  %v3986_v49 = vsel %vm709_vm5, %v3978_v4, %v3985_v8  ;;  %v3984_v13 = vsel %vm709_vm5, %v3983_v9, %v3966_v2 }
0x131e   : > { %3996 = vrot.lane.b32.xlu0 %v3986_v49, %s5633_s24  ;;  %3992 = vrot.lane.b32.xlu2 %v3984_v13, %s5634_s25  ;;  %v4479_v49 = vld [vmem:[%s5612_s17 + $0x8] sm:$0xff]  ;;  %v4478_v13 = vld [vmem:[%s5612_s17] sm:$0xff] }
0x131f   : > { %v3982_v28 = vsel %vm709_vm5, %v3974_v54, %v3981_v12  ;;  %v3980_v41 = vsel %vm709_vm5, %v3979_v10, %v3962_v7  ;;  %4165 = vmatpush.bf16.msrb.mxu0 %v4474_v50  ;;  %4234 = vmatpush.bf16.msra.mxu1 %v4479_v49 }
0x1320   : > { %3988 = vrot.lane.b32.xlu1 %v3982_v28, %s5635_s3  ;;  %4035 = vmatpush.bf16.msrb.mxu2 %v4470_v14 }
0x1323   : > { %4235 = vmatpush.bf16.msra.mxu1 %v4478_v13 }
0x1378   : > { %v3993_v25 = vpop.permute.xlu2 %3992 }
0x1390   : > { %v3997_v53 = vpop.permute.xlu0 %3996 }
0x1392   : > { %v3989_v15 = vpop.permute.xlu1 %3988 }
0x1393   : > { %v3999_v1 = vsel %vm1374_vm7, %v3980_v41, %v3989_v15 }
0x1394   : > { %v4000_v16 = vsel %vm2231_vm8, %v3999_v1, %v3993_v25 }
0x1395   : > { %v4001_v17 = vsel %vm2233_vm9, %v4000_v16, %v3997_v53 }
0x1396   : > { %v4002_v29 = vpack.c.bf16 %v4001_v17, %v4001_v17  ;;  %v4681_v17 = vld [vmem:[%s5610_s15] ss:$0 sm:$0xff] }
0x1398   : > { %4404 = vmatmul.msk.bf16.vlgmr.msrb.gmra.mxu2 %vm623_vm0, %v4002_v29 }
0x141b   : > { %v4037_v37 = vpop.f32.mrf.mxu2 }
0x141c   : > { %v4038_v42 = vadd.f32 %v4676_v18, %v4037_v37 }
0x141e   : > { %v4041_v19 = vadd.f32 %v4038_v42, %v5215_v62  ;;  %v4472_v62 = vld [vmem:[%s5606_s11 + $0x10] sm:$0xff] }
0x141f   : > { %4109 = vmatpush.bf16.msrb.mxu3 %v4472_v62 }
0x1420   : > { %v4046_v20 = vsel %vm623_vm0, %v4041_v19, 0.0 }
0x1421   : > { %4047 = vadd.xlane.f32.xlu1 %v4046_v20  ;;  %v4683_v20 = vld [vmem:[%s5613_s18] ss:$0 sm:$0xff] }
0x1423   : > { %v4039_v58 = vpop.f32.mrf.mxu2 }
0x1494   : > { %v4048_v21 = vpop.xlane.xlu1 %4047 }
0x1495   : > { %v4049_v27 = vmul.f32 %v4048_v21, %v4869_v11 }
0x1497   : > { %v4050_v22 = vsub.f32 %v4041_v19, %v4049_v27 }
0x1499   : > { %v4051_v23 = vmul.f32 %v4050_v22, %v4050_v22 }
0x149b   : > { %v4052_v56 = vsel %vm623_vm0, %v4051_v23, 0.0 }
0x149c   : > { %4053 = vadd.xlane.f32.xlu2 %v4052_v56 }
0x150f   : > { %v4054_v3 = vpop.xlane.xlu2 %4053 }
0x1510   : > { %v4055_v30 = vmul.f32 %v4054_v3, %v4869_v11 }
0x1512   : > { %v4056_v32 = vadd.f32 1e-05, %v4055_v30 }
0x1514   : > { %4724 = vrsqrt.f32 %v4056_v32  ;;  %vm4063_vm3 = vweird.f32 %v4056_v32 }
0x151a   : > { %v4725_v33 = vpop.eup %4724 }
0x151b   : > { %v4058_v34 = vmul.f32 %v4725_v33, %v4056_v32  ;;  %vm4064_vm2 = vweird.f32 %v4725_v33 }
0x151c   : > { %vm4065_vm4 = vmor %vm4063_vm3, %vm4064_vm2 }
0x151d   : > { %v4059_v39 = vmul.f32 %v4725_v33, %v4058_v34 }
0x151f   : > { %v4060_v35 = vmul.f32 0.5, %v4059_v39 }
0x1521   : > { %v4061_v36 = vsub.f32 1.5, %v4060_v35 }
0x1523   : > { %v4062_v38 = vmul.f32 %v4725_v33, %v4061_v36 }
0x1525   : > { %v4066_v44 = vsel %vm4065_vm4, %v4725_v33, %v4062_v38 }
0x1526   : > { %v4067_v45 = vmul.f32 %v4066_v44, %v4050_v22 }
0x1528   : > { %v4071_v47 = vmul.f32 %v4677_v59, %v4067_v45 }
0x152a   : > { %v4075_v48 = vadd.f32 %v4678_v46, %v4071_v47 }
0x152c   : > { %v4076_v40 = vpack.c.bf16 %v4075_v48, %v4075_v48 }
0x152e   : > { %4420 = vmatmul.msk.bf16.vlgmr.msrb.gmra.mxu3 %vm623_vm0, %v4076_v40 }
0x15b1   : > { %v4111_v55 = vpop.f32.mrf.mxu3 }
0x15b2   : > { %v4112_v51 = vadd.f32 %v4679_v52, %v4111_v55 }
0x15b4   : > { %v4115_v57 = vmax.f32 %v4112_v51, 0.0 }
0x15b6   : > { %v4116_v61 = vpack.c.bf16 %v4115_v57, %v4115_v57 }
0x15b8   : > { %4446 = vmatmul.msk.bf16.vlgmr.msrb.gmra.mxu0 %vm2380_vm13, %v4116_v61 }
0x15b9   : > { %v4113_v63 = vpop.f32.mrf.mxu3 }
0x1635   : > { %v4167_v2 = vpop.f32.mrf.mxu0 }
0x1636   : > { %v4168_v4 = vadd.f32 %v4680_v0, %v4167_v2 }
0x1638   : > { %v4171_v6 = vadd.f32 %v4168_v4, %v4041_v19 }
0x163a   : > { %v4174_v43 = vsel %vm623_vm0, %v4171_v6, 0.0 }
0x163b   : > { %4175 = vadd.xlane.f32.xlu0 %v4174_v43 }
0x163d   : > { %v4169_v7 = vpop.f32.mrf.mxu0 }
0x16ae   : > { %v4176_v54 = vpop.xlane.xlu0 %4175 }
0x16af   : > { %v4177_v8 = vmul.f32 %v4176_v54, %v4869_v11 }
0x16b1   : > { %v4178_v9 = vsub.f32 %v4171_v6, %v4177_v8 }
0x16b3   : > { %v4179_v10 = vmul.f32 %v4178_v9, %v4178_v9 }
0x16b5   : > { %v4180_v12 = vsel %vm623_vm0, %v4179_v10, 0.0 }
0x16b6   : > { %4181 = vadd.xlane.f32.xlu1 %v4180_v12 }
0x1729   : > { %v4182_v28 = vpop.xlane.xlu1 %4181 }
0x172a   : > { %v4183_v41 = vmul.f32 %v4182_v28, %v4869_v11  ;;  %v4682_v11 = vld [vmem:[%s5611_s16] ss:$0 sm:$0xff] }
0x172c   : > { %v4184_v5 = vadd.f32 1e-05, %v4183_v41 }
0x172e   : > { %4726 = vrsqrt.f32 %v4184_v5  ;;  %vm4191_vm6 = vweird.f32 %v4184_v5 }
0x1734   : > { %v4727_v14 = vpop.eup %4726 }
0x1735   : > { %v4186_v15 = vmul.f32 %v4727_v14, %v4184_v5  ;;  %vm4192_vm5 = vweird.f32 %v4727_v14 }
0x1736   : > { %vm4193_vm7 = vmor %vm4191_vm6, %vm4192_vm5 }
0x1737   : > { %v4187_v25 = vmul.f32 %v4727_v14, %v4186_v15 }
0x1739   : > { %v4188_v1 = vmul.f32 0.5, %v4187_v25 }
0x173b   : > { %v4189_v53 = vsub.f32 1.5, %v4188_v1 }
0x173d   : > { %v4190_v16 = vmul.f32 %v4727_v14, %v4189_v53 }
0x173f   : > { %v4194_v29 = vsel %vm4193_vm7, %v4727_v14, %v4190_v16 }
0x1740   : > { %v4195_v18 = vmul.f32 %v4194_v29, %v4178_v9 }
0x1742   : > { %v4199_v37 = vmul.f32 %v4681_v17, %v4195_v18 }
0x1744   : > { %v4203_v42 = vadd.f32 %v4682_v11, %v4199_v37 }
0x1746   : > { %v4204_v19 = vpack.c.bf16 %v4203_v42, %v4203_v42 }
0x1748   : > { %4455 = vmatmul.msk.bf16.vlgmr.msra.gmra.mxu1 %vm623_vm0, %v4204_v19 }
0x17c5   : > { %v4237_v58 = vpop.f32.mrf.mxu1 }
0x17c6   : > { %v4238_v21 = vadd.f32 %v4683_v20, %v4237_v58 }
0x17c8   : > { %4241 = vst [vmem:[%s614_s23] sm:$0xff] %v4238_v21 }
0x17cd   : > { %v4239_v27 = vpop.f32.mrf.mxu1 }
0x17ce PF: > { %s29_s0 = sadd.s32 1, %s4735_s0  }
0x17cf   : > { %p26_p4 = scmp.ge.s32.totalorder %s29_s0, 4  }
0x17d1   :  { %28 = sbr.rel (!%p26_p4) target bundleno = 5 (0x5), region = 141 }

</bundles_post_ra>
